<compile_context>
chip_gen: v6e
topology: v6e:2x2x1
jax: 0.10.0
libtpu: 0.0.40
codegen_flags: <defaults>
</compile_context>

<pallas_src>
import functools

import jax
import jax.numpy as jnp
from jax.experimental import pallas as pl
from jax.experimental.pallas import tpu as pltpu


def _mvp_fused_kernel(x_ref, img_ref, w_ref, b_ref, o_ref, *, batch, seq_len):
    """out[:, :S, cols_j] = (x @ W + b)[cols_j];  out[:, S:, cols_j] = img[cols_j]."""
    # x_ref:   (B*S, D)     f32   language embeddings, batch folded into M
    # img_ref: (B, P, TN)   f32   image tokens, this step's column block
    # w_ref:   (D, TN)      bf16  lang2embed weight column block, (in, out) layout
    # b_ref:   (1, TN)      f32   bias column block
    # o_ref:   (B, S+P, TN) f32   fused [lang_proj ; img] column block
    x = x_ref[...].astype(w_ref.dtype)                                # bf16 MXU operand
    y = jnp.dot(x, w_ref[...], preferred_element_type=jnp.float32)    # (B*S, TN) f32 acc
    y = y + b_ref[...]                                                # f32 bias add
    # Scatter the M = B*S result rows back to per-batch output rows.  The row-20
    # boundary is sublane-misaligned (S=20 not a multiple of 8), costing a couple
    # of masked stores / sublane shifts on ~30 KB of data — negligible here.
    for b in range(batch):                                            # static, tiny
        o_ref[b, :seq_len, :] = y[b * seq_len:(b + 1) * seq_len, :].astype(o_ref.dtype)
    # TODO(synk): image pass-through currently routed through vregs; a manual
    # HBM->VMEM DMA overlapped with the matmul would free vld/vst slots, but the
    # ~100 KB copy is minor at these shapes and the vreg copy is lowering-safe.
    o_ref[:, seq_len:, :] = img_ref[...].astype(o_ref.dtype)


def mvp_forward(transformer_embeddings, img_embed, weight_oi, bias, *, n_col_blocks=2):
    """Pallas/JAX equivalent of MVP.forward after the frozen encoders.

    transformer_embeddings: (B, S, D)  DistilBERT last_hidden_state
    img_embed:              (B, P, D)  r3m / ViT-B token representations
    weight_oi:              (D, D)     lang2embed weight in PyTorch (out, in) layout
    bias:                   (D,)       lang2embed bias
    returns:                (B, S+P, D) == torch.cat([lang2embed(lang), img_embed], dim=1)
    """
    B, S, D = transformer_embeddings.shape
    Bi, P, Di = img_embed.shape
    assert Bi == B and Di == D
    assert weight_oi.shape == (D, D) and bias.shape == (D,)
    assert D % (128 * n_col_blocks) == 0
    tn = D // n_col_blocks

    # Explicit layout fix: nn.Linear computes x @ W.T, so transpose to (in, out).
    w_io = jnp.transpose(weight_oi).astype(jnp.bfloat16)   # halves dominant HBM fetch
    bias2d = bias.reshape(1, D).astype(jnp.float32)

    # Fold batch into the matmul M dimension (free: row-major (B,S,D) == (B*S,D)).
    # NOTE: if the frozen encoders can emit bf16 activations, feed them directly —
    # the in-kernel cast then disappears and the activation DMA halves.
    lang2d = transformer_embeddings.reshape(B * S, D)

    kernel = functools.partial(_mvp_fused_kernel, batch=B, seq_len=S)

    cost = pl.CostEstimate(
        flops=2 * B * S * D * D,
        transcendentals=0,
        bytes_accessed=(
            w_io.size * 2                          # bf16 weight (once per core)
            + lang2d.size * transformer_embeddings.dtype.itemsize
            + img_embed.size * img_embed.dtype.itemsize
            + B * (S + P) * D * 4                  # f32 fused output
            + D * 4                                # f32 bias
        ),
    )

    return pl.pallas_call(
        kernel,
        out_shape=jax.ShapeDtypeStruct((B, S + P, D), jnp.float32),
        grid_spec=pltpu.PrefetchScalarGridSpec(
            num_scalar_prefetch=0,
            grid=(n_col_blocks,),                                    # split weight/output N
            in_specs=[
                pl.BlockSpec((B * S, D), lambda j: (0, 0)),          # lang: constant block, fetched once
                pl.BlockSpec((B, P, tn), lambda j: (0, 0, j)),       # img columns of this step
                pl.BlockSpec((D, tn), lambda j: (0, j)),             # weight column block
                pl.BlockSpec((1, tn), lambda j: (0, j)),             # bias column block
            ],
            out_specs=pl.BlockSpec((B, S + P, tn), lambda j: (0, 0, j)),
        ),
        compiler_params=pltpu.CompilerParams(
            # N-column blocks are independent -> megacore shards the dominant
            # weight DMA across v7x's two TensorCores instead of duplicating it.
            dimension_semantics=("parallel",),
        ),
        cost_estimate=cost,
    )(lang2d, img_embed, w_io, bias2d)


if __name__ == "__main__":
    # TODO(synk): the frozen DistilBERT tokenizer+LM and the MVP ViT-B (r3m) image
    # encoder are external pretrained models with no Pallas equivalent here; their
    # outputs are simulated with random features of the correct shapes.
    B = 2          # batch
    S = 20         # tokenizer max_length=20
    D = 768        # embed_dim
    P = 16         # number of image tokens (small synthetic ViT output)

    key = jax.random.PRNGKey(0)
    k_lang, k_img, k_w, k_b = jax.random.split(key, 4)

    transformer_embeddings = jax.random.normal(k_lang, (B, S, D), dtype=jnp.float32)
    img_embed = jax.random.normal(k_img, (B, P, D), dtype=jnp.float32)

    # Deterministic nn.Linear(768, 768) init in the PyTorch (out, in) layout.
    bound = 1.0 / jnp.sqrt(jnp.float32(D))
    weight_oi = jax.random.uniform(k_w, (D, D), minval=-bound, maxval=bound,
                                   dtype=jnp.float32)
    bias = jax.random.uniform(k_b, (D,), minval=-bound, maxval=bound,
                              dtype=jnp.float32)

    out = jax.jit(mvp_forward)(transformer_embeddings, img_embed, weight_oi, bias)
    out = jax.block_until_ready(out)

    # Reference: f32 nn.Linear (x @ W.T + b) followed by the dim=1 concat.  The
    # kernel uses bf16 operands with f32 accumulation, so tolerance covers bf16
    # rounding of the matmul.
    ref = jnp.concatenate(
        [transformer_embeddings @ weight_oi.T + bias, img_embed], axis=1
    )
    assert out.shape == (B, S + P, D), out.shape
    max_err = float(jnp.max(jnp.abs(out - ref)))
    assert jnp.allclose(out, ref, atol=3e-2, rtol=3e-2), max_err
    # Image rows are a straight f32 copy — must be exact.
    assert jnp.array_equal(out[:, S:, :], img_embed)

    print("KERNEL_OK")
</pallas_src>

<mosaic_0001>
module attributes {stable_mosaic.version = 11 : i64} {
  func.func @_mvp_fused_kernel(%arg0: i32, %arg1: memref<40x768xf32, #tpu.memory_space<vmem>>, %arg2: memref<2x16x384xf32, #tpu.memory_space<vmem>>, %arg3: memref<768x384xbf16, #tpu.memory_space<vmem>>, %arg4: memref<1x384xf32, #tpu.memory_space<vmem>>, %arg5: memref<2x36x384xf32, #tpu.memory_space<vmem>>) attributes {dimension_semantics = [#tpu.dimension_semantics<parallel>], iteration_bounds = array<i64: 2>, scalar_prefetch = 0 : i64, scratch_operands = 0 : i64, tpu.core_type = #tpu.core_type<tc>, window_params = [{pipeline_mode = #tpu.pipeline_mode<synchronous>, transform_indices = @transform_0, window_bounds = array<i64: 40, 768>}, {transform_indices = @transform_1, window_bounds = array<i64: 2, 16, 384>}, {transform_indices = @transform_2, window_bounds = array<i64: 768, 384>}, {transform_indices = @transform_3, window_bounds = array<i64: 1, 384>}, {transform_indices = @transform_4, window_bounds = array<i64: 2, 36, 384>}]} {
    %c0 = arith.constant 0 : index
    %c0_0 = arith.constant 0 : index
    %0 = vector.load %arg1[%c0, %c0_0] : memref<40x768xf32, #tpu.memory_space<vmem>>, vector<40x768xf32>
    %1 = arith.truncf %0 : vector<40x768xf32> to vector<40x768xbf16>
    %c0_1 = arith.constant 0 : index
    %c0_2 = arith.constant 0 : index
    %2 = vector.load %arg3[%c0_1, %c0_2] : memref<768x384xbf16, #tpu.memory_space<vmem>>, vector<768x384xbf16>
    %cst = arith.constant dense<0.000000e+00> : vector<40x384xf32>
    %3 = tpu.matmul %1, %2, %cst {dimension_numbers = #tpu.dot_dimension_numbers<[1], [0], [0], [1], [0, 0, 1, 1], [], []>} : vector<40x768xbf16>, vector<768x384xbf16>, vector<40x384xf32> -> vector<40x384xf32>
    %c0_3 = arith.constant 0 : index
    %c0_4 = arith.constant 0 : index
    %4 = vector.load %arg4[%c0_3, %c0_4] : memref<1x384xf32, #tpu.memory_space<vmem>>, vector<1x384xf32>
    %5 = vector.broadcast %4 : vector<1x384xf32> to vector<40x384xf32>
    %6 = arith.addf %3, %5 : vector<40x384xf32>
    %7 = vector.extract_strided_slice %6 {offsets = [0, 0], sizes = [20, 384], strides = [1, 1]} : vector<40x384xf32> to vector<20x384xf32>
    %c0_5 = arith.constant 0 : index
    %c0_6 = arith.constant 0 : index
    %c0_7 = arith.constant 0 : index
    %8 = vector.load %arg5[%c0_5, %c0_6, %c0_7] : memref<2x36x384xf32, #tpu.memory_space<vmem>>, vector<1x20x384xf32>
    %9 = vector.shape_cast %8 : vector<1x20x384xf32> to vector<20x384xf32>
    %10 = vector.shape_cast %7 : vector<20x384xf32> to vector<1x20x384xf32>
    tpu.vector_store %arg5[%c0_5, %c0_6, %c0_7], %10 {strides = array<i32>} : memref<2x36x384xf32, #tpu.memory_space<vmem>>, vector<1x20x384xf32>,
    %11 = vector.extract_strided_slice %6 {offsets = [20, 0], sizes = [20, 384], strides = [1, 1]} : vector<40x384xf32> to vector<20x384xf32>
    %c1 = arith.constant 1 : index
    %c0_8 = arith.constant 0 : index
    %c0_9 = arith.constant 0 : index
    %12 = vector.load %arg5[%c1, %c0_8, %c0_9] : memref<2x36x384xf32, #tpu.memory_space<vmem>>, vector<1x20x384xf32>
    %13 = vector.shape_cast %12 : vector<1x20x384xf32> to vector<20x384xf32>
    %14 = vector.shape_cast %11 : vector<20x384xf32> to vector<1x20x384xf32>
    tpu.vector_store %arg5[%c1, %c0_8, %c0_9], %14 {strides = array<i32>} : memref<2x36x384xf32, #tpu.memory_space<vmem>>, vector<1x20x384xf32>,
    %c0_10 = arith.constant 0 : index
    %c0_11 = arith.constant 0 : index
    %c0_12 = arith.constant 0 : index
    %15 = vector.load %arg2[%c0_10, %c0_11, %c0_12] : memref<2x16x384xf32, #tpu.memory_space<vmem>>, vector<2x16x384xf32>
    %c0_13 = arith.constant 0 : index
    %c20 = arith.constant 20 : index
    %c0_14 = arith.constant 0 : index
    %16 = vector.load %arg5[%c0_13, %c20, %c0_14] : memref<2x36x384xf32, #tpu.memory_space<vmem>>, vector<2x16x384xf32>
    tpu.vector_store %arg5[%c0_13, %c20, %c0_14], %15 {strides = array<i32>} : memref<2x36x384xf32, #tpu.memory_space<vmem>>, vector<2x16x384xf32>,
    return
  }
  func.func @transform_0(%arg0: i32) -> (i32, i32) {
    %c0_i32 = arith.constant 0 : i32
    %c0_i32_0 = arith.constant 0 : i32
    %c0_i32_1 = arith.constant 0 : i32
    return %c0_i32, %c0_i32_0 : i32, i32
  }
  func.func @transform_1(%arg0: i32) -> (i32, i32, i32) {
    %c0_i32 = arith.constant 0 : i32
    %c0_i32_0 = arith.constant 0 : i32
    %c0_i32_1 = arith.constant 0 : i32
    return %c0_i32, %c0_i32_0, %arg0 : i32, i32, i32
  }
  func.func @transform_2(%arg0: i32) -> (i32, i32) {
    %c0_i32 = arith.constant 0 : i32
    %c0_i32_0 = arith.constant 0 : i32
    return %c0_i32, %arg0 : i32, i32
  }
  func.func @transform_3(%arg0: i32) -> (i32, i32) {
    %c0_i32 = arith.constant 0 : i32
    %c0_i32_0 = arith.constant 0 : i32
    return %c0_i32, %arg0 : i32, i32
  }
  func.func @transform_4(%arg0: i32) -> (i32, i32, i32) {
    %c0_i32 = arith.constant 0 : i32
    %c0_i32_0 = arith.constant 0 : i32
    %c0_i32_1 = arith.constant 0 : i32
    return %c0_i32, %c0_i32_0, %arg0 : i32, i32, i32
  }
}

</mosaic_0001>

<bundles_post_ra>
// kernel: mvp_forward.1
= control target key start
LH: loop header
LB: loop body
LE: loop exit
PB: predicated region body
PF: predicated region fallthrough
CT: control target
= control target key end

     0   :  { %s3114_s15 = smov 0   ;;  %s3116_s16 = smov 0   ;;  %s4064_s0 = inlined_call_operand.vmem [shape: f32[40,768], index: 0, kind: input, shape index: {}]   ;;  %s4065_s1 = inlined_call_operand.vmem [shape: f32[2,16,768], index: 1, kind: input, shape index: {}]   ;;  %s4066_s2 = inlined_call_operand.vmem [shape: bf16[768,768], index: 2, kind: input, shape index: {}]   ;;  %s4067_s3 = inlined_call_operand.vmem [shape: f32[1,768], index: 3, kind: input, shape index: {}]   ;;  %s4068_s4 = inlined_call_operand.vmem [shape: f32[2,36,768], index: 4, kind: output, shape index: {}]  }
   0x1   :  { %s3118_s17 = smov 0  }
   0x2 LB: > { %s3130_s18 = sadd.s32 4294967295, %s3087_s17   ;;  %s3133_s19 = sadd.s32 1, %s3087_s17   ;;  %s3087_s17 = sphi %s3118_s17, %s4073_s17   ;;  %s3083_s16 = sphi %s3116_s16, %s4072_s16   ;;  %s3079_s15 = sphi %s3114_s15, %s4071_s15  }
   0x3   : > { %s39_s20 = ssub.s32 %s3087_s17, %s3133_s19  ;;  %s42_s21 = sadd.s32 1, %s3083_s16 }
   0x4   : > { %p40_p0 = scmp.eq.s32.totalorder %s39_s20, 0  ;;  %p49_p1 = scmp.ne.s32.totalorder %s3083_s16, %s3079_s15 }
   0x5   : > { %p50_p2 = scmp.eq.s32.totalorder %s3087_s17, 0  ;;  %p131_p3 = scmp.eq.s32.totalorder %s3130_s18, 1 }
   0x6   : > { %s3143_s22 = scalar_select %p40_p0, %s3083_s16, %s42_s21  }
   0x7   : > { %p3145_p4 = por %p50_p2, %p49_p1  ;;  %p3149_p5 = por %p131_p3, %p49_p1 }
   0x8   : > { %p2371_p6 = scmp.ge.s32.totalorder %s3087_s17, 2 }
   0xa   : > { %156 = sbr.rel (%p2371_p6) target bundleno = 143 (0x8f), region = 20 }
   0xf   : > { %159 = sbr.rel (!%p3145_p4) target bundleno = 26 (0x1a), region = 24  ;;  %s161_s25 = sand.u32 (%p3145_p4), 1, %s3083_s16  }
  0x10   : > { %s2723_s26 = smul.u32 (%p3145_p4), 24, %s3087_s17 }
  0x11   : > { %s2844_s27 = smul.u32 (%p3145_p4), 96, %s161_s25 }
  0x12   : > { %s166_s30 = scalar_lea.vmem (%p3145_p4), %s4065_s1, %s2723_s26 }
  0x13   : > { %v179_v0 = vld [vmem:[%s166_s30] sm:$0xff] (%p3145_p4)  ;;  %v181_v1 = vld [vmem:[%s166_s30 + $0x8] sm:$0xff] (%p3145_p4)  ;;  %v183_v2 = vld [vmem:[%s166_s30 + $0x10] sm:$0xff] (%p3145_p4)  ;;  %s163_s5 = scalar_lea.vmem (%p3145_p4), [#allocation2], %s2844_s27 }
  0x14   : > { %180 = vst [vmem:[%s163_s5] sm:$0xff] %v179_v0  ;;  %182 = vst [vmem:[%s163_s5 + $0x8] sm:$0xff] %v181_v1  ;;  %v185_v3 = vld [vmem:[%s166_s30 + $0x30] sm:$0xff]  ;;  %v187_v4 = vld [vmem:[%s166_s30 + $0x38] sm:$0xff] }
  0x15   : > { %184 = vst [vmem:[%s163_s5 + $0x10] sm:$0xff] %v183_v2  ;;  %v189_v5 = vld [vmem:[%s166_s30 + $0x40] sm:$0xff]  ;;  %186 = vst [vmem:[%s163_s5 + $0x18] sm:$0xff] %v185_v3  ;;  %v193_v7 = vld [vmem:[%s166_s30 + $0x68] sm:$0xff] }
  0x16   : > { %188 = vst [vmem:[%s163_s5 + $0x20] sm:$0xff] %v187_v4  ;;  %190 = vst [vmem:[%s163_s5 + $0x28] sm:$0xff] %v189_v5  ;;  %v191_v6 = vld [vmem:[%s166_s30 + $0x60] sm:$0xff]  ;;  %v195_v8 = vld [vmem:[%s166_s30 + $0x70] sm:$0xff] }
  0x17   : > { %192 = vst [vmem:[%s163_s5 + $0x30] sm:$0xff] %v191_v6  ;;  %194 = vst [vmem:[%s163_s5 + $0x38] sm:$0xff] %v193_v7  ;;  %v197_v9 = vld [vmem:[%s166_s30 + $0x90] sm:$0xff]  ;;  %v199_v10 = vld [vmem:[%s166_s30 + $0x98] sm:$0xff] }
  0x18   : > { %196 = vst [vmem:[%s163_s5 + $0x40] sm:$0xff] %v195_v8  ;;  %v201_v11 = vld [vmem:[%s166_s30 + $0xa0] sm:$0xff]  ;;  %198 = vst [vmem:[%s163_s5 + $0x48] sm:$0xff] %v197_v9 }
  0x19   : > { %200 = vst [vmem:[%s163_s5 + $0x50] sm:$0xff] %v199_v10  ;;  %202 = vst [vmem:[%s163_s5 + $0x58] sm:$0xff] %v201_v11 }
  0x1a PF: > { %208 = sbr.rel (!%p3145_p4) target bundleno = 143 (0x8f), region = 47  ;;  %s210_s6 = sand.u32 (%p3145_p4), 1, %s3083_s16  }
  0x1b   : > { %s2724_s7 = smul.u32 (%p3145_p4), 12, %s3087_s17 }
  0x1c   : > { %s2845_s8 = smul.u32 (%p3145_p4), 1152, %s210_s6 }
  0x1d   : > { %s3168_s11 = scalar_lea.vmem (%p3145_p4), %s4066_s2, %s2724_s7 }
  0x1e   : > { %v230_v12 = vld [vmem:[%s3168_s11] sm:$0xff] (%p3145_p4)  ;;  %v232_v13 = vld [vmem:[%s3168_s11 + $0x18] sm:$0xff] (%p3145_p4)  ;;  %v234_v14 = vld [vmem:[%s3168_s11 + $0x30] sm:$0xff] (%p3145_p4)  ;;  %s3173_s12 = scalar_lea.vmem (%p3145_p4), [#allocation3], %s2845_s8 }
  0x1f   : > { %231 = vst [vmem:[%s3173_s12] sm:$0xff] %v230_v12  ;;  %233 = vst [vmem:[%s3173_s12 + $0xc] sm:$0xff] %v232_v13  ;;  %v236_v15 = vld [vmem:[%s3168_s11 + $0x48] sm:$0xff]  ;;  %v238_v16 = vld [vmem:[%s3168_s11 + $0x60] sm:$0xff] }
  0x20   : > { %235 = vst [vmem:[%s3173_s12 + $0x18] sm:$0xff] %v234_v14  ;;  %v240_v17 = vld [vmem:[%s3168_s11 + $0x78] sm:$0xff]  ;;  %237 = vst [vmem:[%s3173_s12 + $0x24] sm:$0xff] %v236_v15  ;;  %v242_v18 = vld [vmem:[%s3168_s11 + $0x90] sm:$0xff] }
  0x21   : > { %239 = vst [vmem:[%s3173_s12 + $0x30] sm:$0xff] %v238_v16  ;;  %241 = vst [vmem:[%s3173_s12 + $0x3c] sm:$0xff] %v240_v17  ;;  %v244_v19 = vld [vmem:[%s3168_s11 + $0xa8] sm:$0xff]  ;;  %v246_v20 = vld [vmem:[%s3168_s11 + $0xc0] sm:$0xff] }
  0x22   : > { %243 = vst [vmem:[%s3173_s12 + $0x48] sm:$0xff] %v242_v18  ;;  %245 = vst [vmem:[%s3173_s12 + $0x54] sm:$0xff] %v244_v19  ;;  %v248_v21 = vld [vmem:[%s3168_s11 + $0xd8] sm:$0xff]  ;;  %v250_v22 = vld [vmem:[%s3168_s11 + $0xf0] sm:$0xff] }
  0x23   : > { %247 = vst [vmem:[%s3173_s12 + $0x60] sm:$0xff] %v246_v20  ;;  %v252_v23 = vld [vmem:[%s3168_s11 + $0x108] sm:$0xff]  ;;  %249 = vst [vmem:[%s3173_s12 + $0x6c] sm:$0xff] %v248_v21  ;;  %v254_v24 = vld [vmem:[%s3168_s11 + $0x120] sm:$0xff] }
  0x24   : > { %251 = vst [vmem:[%s3173_s12 + $0x78] sm:$0xff] %v250_v22  ;;  %253 = vst [vmem:[%s3173_s12 + $0x84] sm:$0xff] %v252_v23  ;;  %v256_v25 = vld [vmem:[%s3168_s11 + $0x138] sm:$0xff]  ;;  %v258_v26 = vld [vmem:[%s3168_s11 + $0x150] sm:$0xff] }
  0x25   : > { %255 = vst [vmem:[%s3173_s12 + $0x90] sm:$0xff] %v254_v24  ;;  %257 = vst [vmem:[%s3173_s12 + $0x9c] sm:$0xff] %v256_v25  ;;  %v260_v27 = vld [vmem:[%s3168_s11 + $0x168] sm:$0xff]  ;;  %v262_v28 = vld [vmem:[%s3168_s11 + $0x180] sm:$0xff] }
  0x26   : > { %259 = vst [vmem:[%s3173_s12 + $0xa8] sm:$0xff] %v258_v26  ;;  %v264_v29 = vld [vmem:[%s3168_s11 + $0x198] sm:$0xff]  ;;  %261 = vst [vmem:[%s3173_s12 + $0xb4] sm:$0xff] %v260_v27  ;;  %v266_v30 = vld [vmem:[%s3168_s11 + $0x1b0] sm:$0xff] }
  0x27   : > { %263 = vst [vmem:[%s3173_s12 + $0xc0] sm:$0xff] %v262_v28  ;;  %265 = vst [vmem:[%s3173_s12 + $0xcc] sm:$0xff] %v264_v29  ;;  %v268_v31 = vld [vmem:[%s3168_s11 + $0x1c8] sm:$0xff]  ;;  %v270_v32 = vld [vmem:[%s3168_s11 + $0x1e0] sm:$0xff] }
  0x28   : > { %267 = vst [vmem:[%s3173_s12 + $0xd8] sm:$0xff] %v266_v30  ;;  %269 = vst [vmem:[%s3173_s12 + $0xe4] sm:$0xff] %v268_v31  ;;  %v272_v33 = vld [vmem:[%s3168_s11 + $0x1f8] sm:$0xff]  ;;  %v274_v34 = vld [vmem:[%s3168_s11 + $0x210] sm:$0xff] }
  0x29   : > { %271 = vst [vmem:[%s3173_s12 + $0xf0] sm:$0xff] %v270_v32  ;;  %v276_v35 = vld [vmem:[%s3168_s11 + $0x228] sm:$0xff]  ;;  %273 = vst [vmem:[%s3173_s12 + $0xfc] sm:$0xff] %v272_v33  ;;  %v278_v36 = vld [vmem:[%s3168_s11 + $0x240] sm:$0xff] }
  0x2a   : > { %275 = vst [vmem:[%s3173_s12 + $0x108] sm:$0xff] %v274_v34  ;;  %277 = vst [vmem:[%s3173_s12 + $0x114] sm:$0xff] %v276_v35  ;;  %v280_v37 = vld [vmem:[%s3168_s11 + $0x258] sm:$0xff]  ;;  %v282_v38 = vld [vmem:[%s3168_s11 + $0x270] sm:$0xff] }
  0x2b   : > { %279 = vst [vmem:[%s3173_s12 + $0x120] sm:$0xff] %v278_v36  ;;  %281 = vst [vmem:[%s3173_s12 + $0x12c] sm:$0xff] %v280_v37  ;;  %v284_v39 = vld [vmem:[%s3168_s11 + $0x288] sm:$0xff]  ;;  %v286_v40 = vld [vmem:[%s3168_s11 + $0x2a0] sm:$0xff] }
  0x2c   : > { %283 = vst [vmem:[%s3173_s12 + $0x138] sm:$0xff] %v282_v38  ;;  %v288_v41 = vld [vmem:[%s3168_s11 + $0x2b8] sm:$0xff]  ;;  %285 = vst [vmem:[%s3173_s12 + $0x144] sm:$0xff] %v284_v39  ;;  %v290_v42 = vld [vmem:[%s3168_s11 + $0x2d0] sm:$0xff] }
  0x2d   : > { %287 = vst [vmem:[%s3173_s12 + $0x150] sm:$0xff] %v286_v40  ;;  %289 = vst [vmem:[%s3173_s12 + $0x15c] sm:$0xff] %v288_v41  ;;  %v292_v43 = vld [vmem:[%s3168_s11 + $0x2e8] sm:$0xff]  ;;  %v294_v44 = vld [vmem:[%s3168_s11 + $0x300] sm:$0xff] }
  0x2e   : > { %291 = vst [vmem:[%s3173_s12 + $0x168] sm:$0xff] %v290_v42  ;;  %293 = vst [vmem:[%s3173_s12 + $0x174] sm:$0xff] %v292_v43  ;;  %v296_v45 = vld [vmem:[%s3168_s11 + $0x318] sm:$0xff]  ;;  %v298_v46 = vld [vmem:[%s3168_s11 + $0x330] sm:$0xff] }
  0x2f   : > { %295 = vst [vmem:[%s3173_s12 + $0x180] sm:$0xff] %v294_v44  ;;  %v300_v47 = vld [vmem:[%s3168_s11 + $0x348] sm:$0xff]  ;;  %297 = vst [vmem:[%s3173_s12 + $0x18c] sm:$0xff] %v296_v45  ;;  %v302_v48 = vld [vmem:[%s3168_s11 + $0x360] sm:$0xff] }
  0x30   : > { %299 = vst [vmem:[%s3173_s12 + $0x198] sm:$0xff] %v298_v46  ;;  %301 = vst [vmem:[%s3173_s12 + $0x1a4] sm:$0xff] %v300_v47  ;;  %v304_v49 = vld [vmem:[%s3168_s11 + $0x378] sm:$0xff]  ;;  %v306_v50 = vld [vmem:[%s3168_s11 + $0x390] sm:$0xff] }
  0x31   : > { %303 = vst [vmem:[%s3173_s12 + $0x1b0] sm:$0xff] %v302_v48  ;;  %305 = vst [vmem:[%s3173_s12 + $0x1bc] sm:$0xff] %v304_v49  ;;  %v308_v51 = vld [vmem:[%s3168_s11 + $0x3a8] sm:$0xff]  ;;  %v310_v52 = vld [vmem:[%s3168_s11 + $0x3c0] sm:$0xff] }
  0x32   : > { %307 = vst [vmem:[%s3173_s12 + $0x1c8] sm:$0xff] %v306_v50  ;;  %v312_v53 = vld [vmem:[%s3168_s11 + $0x3d8] sm:$0xff]  ;;  %309 = vst [vmem:[%s3173_s12 + $0x1d4] sm:$0xff] %v308_v51  ;;  %v314_v54 = vld [vmem:[%s3168_s11 + $0x3f0] sm:$0xff] }
  0x33   : > { %311 = vst [vmem:[%s3173_s12 + $0x1e0] sm:$0xff] %v310_v52  ;;  %313 = vst [vmem:[%s3173_s12 + $0x1ec] sm:$0xff] %v312_v53  ;;  %v316_v55 = vld [vmem:[%s3168_s11 + $0x408] sm:$0xff]  ;;  %v318_v56 = vld [vmem:[%s3168_s11 + $0x420] sm:$0xff] }
  0x34   : > { %315 = vst [vmem:[%s3173_s12 + $0x1f8] sm:$0xff] %v314_v54  ;;  %317 = vst [vmem:[%s3173_s12 + $0x204] sm:$0xff] %v316_v55  ;;  %v320_v57 = vld [vmem:[%s3168_s11 + $0x438] sm:$0xff]  ;;  %v322_v58 = vld [vmem:[%s3168_s11 + $0x450] sm:$0xff] }
  0x35   : > { %319 = vst [vmem:[%s3173_s12 + $0x210] sm:$0xff] %v318_v56  ;;  %v324_v59 = vld [vmem:[%s3168_s11 + $0x468] sm:$0xff]  ;;  %321 = vst [vmem:[%s3173_s12 + $0x21c] sm:$0xff] %v320_v57  ;;  %v326_v60 = vld [vmem:[%s3168_s11 + $0x480] sm:$0xff] }
  0x36   : > { %323 = vst [vmem:[%s3173_s12 + $0x228] sm:$0xff] %v322_v58  ;;  %325 = vst [vmem:[%s3173_s12 + $0x234] sm:$0xff] %v324_v59  ;;  %v328_v61 = vld [vmem:[%s3168_s11 + $0x498] sm:$0xff]  ;;  %v330_v62 = vld [vmem:[%s3168_s11 + $0x4b0] sm:$0xff] }
  0x37   : > { %327 = vst [vmem:[%s3173_s12 + $0x240] sm:$0xff] %v326_v60  ;;  %329 = vst [vmem:[%s3173_s12 + $0x24c] sm:$0xff] %v328_v61  ;;  %v332_v63 = vld [vmem:[%s3168_s11 + $0x4c8] sm:$0xff]  ;;  %v334_v0 = vld [vmem:[%s3168_s11 + $0x4e0] sm:$0xff] }
  0x38   : > { %331 = vst [vmem:[%s3173_s12 + $0x258] sm:$0xff] %v330_v62  ;;  %v336_v1 = vld [vmem:[%s3168_s11 + $0x4f8] sm:$0xff]  ;;  %333 = vst [vmem:[%s3173_s12 + $0x264] sm:$0xff] %v332_v63  ;;  %v338_v2 = vld [vmem:[%s3168_s11 + $0x510] sm:$0xff] }
  0x39   : > { %335 = vst [vmem:[%s3173_s12 + $0x270] sm:$0xff] %v334_v0  ;;  %337 = vst [vmem:[%s3173_s12 + $0x27c] sm:$0xff] %v336_v1  ;;  %v340_v3 = vld [vmem:[%s3168_s11 + $0x528] sm:$0xff]  ;;  %v342_v4 = vld [vmem:[%s3168_s11 + $0x540] sm:$0xff] }
  0x3a   : > { %339 = vst [vmem:[%s3173_s12 + $0x288] sm:$0xff] %v338_v2  ;;  %341 = vst [vmem:[%s3173_s12 + $0x294] sm:$0xff] %v340_v3  ;;  %v344_v5 = vld [vmem:[%s3168_s11 + $0x558] sm:$0xff]  ;;  %v346_v6 = vld [vmem:[%s3168_s11 + $0x570] sm:$0xff] }
  0x3b   : > { %343 = vst [vmem:[%s3173_s12 + $0x2a0] sm:$0xff] %v342_v4  ;;  %v348_v7 = vld [vmem:[%s3168_s11 + $0x588] sm:$0xff]  ;;  %345 = vst [vmem:[%s3173_s12 + $0x2ac] sm:$0xff] %v344_v5  ;;  %v350_v8 = vld [vmem:[%s3168_s11 + $0x5a0] sm:$0xff] }
  0x3c   : > { %347 = vst [vmem:[%s3173_s12 + $0x2b8] sm:$0xff] %v346_v6  ;;  %349 = vst [vmem:[%s3173_s12 + $0x2c4] sm:$0xff] %v348_v7  ;;  %v352_v9 = vld [vmem:[%s3168_s11 + $0x5b8] sm:$0xff]  ;;  %v354_v10 = vld [vmem:[%s3168_s11 + $0x5d0] sm:$0xff] }
  0x3d   : > { %351 = vst [vmem:[%s3173_s12 + $0x2d0] sm:$0xff] %v350_v8  ;;  %353 = vst [vmem:[%s3173_s12 + $0x2dc] sm:$0xff] %v352_v9  ;;  %v356_v11 = vld [vmem:[%s3168_s11 + $0x5e8] sm:$0xff]  ;;  %v358_v12 = vld [vmem:[%s3168_s11 + $0x600] sm:$0xff] }
  0x3e   : > { %355 = vst [vmem:[%s3173_s12 + $0x2e8] sm:$0xff] %v354_v10  ;;  %v360_v13 = vld [vmem:[%s3168_s11 + $0x618] sm:$0xff]  ;;  %357 = vst [vmem:[%s3173_s12 + $0x2f4] sm:$0xff] %v356_v11  ;;  %v362_v14 = vld [vmem:[%s3168_s11 + $0x630] sm:$0xff] }
  0x3f   : > { %359 = vst [vmem:[%s3173_s12 + $0x300] sm:$0xff] %v358_v12  ;;  %361 = vst [vmem:[%s3173_s12 + $0x30c] sm:$0xff] %v360_v13  ;;  %v364_v15 = vld [vmem:[%s3168_s11 + $0x648] sm:$0xff]  ;;  %v366_v16 = vld [vmem:[%s3168_s11 + $0x660] sm:$0xff] }
  0x40   : > { %363 = vst [vmem:[%s3173_s12 + $0x318] sm:$0xff] %v362_v14  ;;  %365 = vst [vmem:[%s3173_s12 + $0x324] sm:$0xff] %v364_v15  ;;  %v368_v17 = vld [vmem:[%s3168_s11 + $0x678] sm:$0xff]  ;;  %v370_v18 = vld [vmem:[%s3168_s11 + $0x690] sm:$0xff] }
  0x41   : > { %367 = vst [vmem:[%s3173_s12 + $0x330] sm:$0xff] %v366_v16  ;;  %v372_v19 = vld [vmem:[%s3168_s11 + $0x6a8] sm:$0xff]  ;;  %369 = vst [vmem:[%s3173_s12 + $0x33c] sm:$0xff] %v368_v17  ;;  %v374_v20 = vld [vmem:[%s3168_s11 + $0x6c0] sm:$0xff] }
  0x42   : > { %371 = vst [vmem:[%s3173_s12 + $0x348] sm:$0xff] %v370_v18  ;;  %373 = vst [vmem:[%s3173_s12 + $0x354] sm:$0xff] %v372_v19  ;;  %v376_v21 = vld [vmem:[%s3168_s11 + $0x6d8] sm:$0xff]  ;;  %v378_v22 = vld [vmem:[%s3168_s11 + $0x6f0] sm:$0xff] }
  0x43   : > { %375 = vst [vmem:[%s3173_s12 + $0x360] sm:$0xff] %v374_v20  ;;  %377 = vst [vmem:[%s3173_s12 + $0x36c] sm:$0xff] %v376_v21  ;;  %v380_v23 = vld [vmem:[%s3168_s11 + $0x708] sm:$0xff]  ;;  %v382_v24 = vld [vmem:[%s3168_s11 + $0x720] sm:$0xff] }
  0x44   : > { %379 = vst [vmem:[%s3173_s12 + $0x378] sm:$0xff] %v378_v22  ;;  %v384_v25 = vld [vmem:[%s3168_s11 + $0x738] sm:$0xff]  ;;  %381 = vst [vmem:[%s3173_s12 + $0x384] sm:$0xff] %v380_v23  ;;  %v386_v26 = vld [vmem:[%s3168_s11 + $0x750] sm:$0xff] }
  0x45   : > { %383 = vst [vmem:[%s3173_s12 + $0x390] sm:$0xff] %v382_v24  ;;  %385 = vst [vmem:[%s3173_s12 + $0x39c] sm:$0xff] %v384_v25  ;;  %v388_v27 = vld [vmem:[%s3168_s11 + $0x768] sm:$0xff]  ;;  %v390_v28 = vld [vmem:[%s3168_s11 + $0x780] sm:$0xff] }
  0x46   : > { %387 = vst [vmem:[%s3173_s12 + $0x3a8] sm:$0xff] %v386_v26  ;;  %389 = vst [vmem:[%s3173_s12 + $0x3b4] sm:$0xff] %v388_v27  ;;  %v392_v29 = vld [vmem:[%s3168_s11 + $0x798] sm:$0xff]  ;;  %v394_v30 = vld [vmem:[%s3168_s11 + $0x7b0] sm:$0xff] }
  0x47   : > { %391 = vst [vmem:[%s3173_s12 + $0x3c0] sm:$0xff] %v390_v28  ;;  %v396_v31 = vld [vmem:[%s3168_s11 + $0x7c8] sm:$0xff]  ;;  %393 = vst [vmem:[%s3173_s12 + $0x3cc] sm:$0xff] %v392_v29  ;;  %v398_v32 = vld [vmem:[%s3168_s11 + $0x7e0] sm:$0xff] }
  0x48   : > { %395 = vst [vmem:[%s3173_s12 + $0x3d8] sm:$0xff] %v394_v30  ;;  %397 = vst [vmem:[%s3173_s12 + $0x3e4] sm:$0xff] %v396_v31  ;;  %v400_v33 = vld [vmem:[%s3168_s11 + $0x7f8] sm:$0xff]  ;;  %v402_v34 = vld [vmem:[%s3168_s11 + $0x810] sm:$0xff] }
  0x49   : > { %399 = vst [vmem:[%s3173_s12 + $0x3f0] sm:$0xff] %v398_v32  ;;  %401 = vst [vmem:[%s3173_s12 + $0x3fc] sm:$0xff] %v400_v33  ;;  %v404_v35 = vld [vmem:[%s3168_s11 + $0x828] sm:$0xff]  ;;  %v406_v36 = vld [vmem:[%s3168_s11 + $0x840] sm:$0xff] }
  0x4a   : > { %403 = vst [vmem:[%s3173_s12 + $0x408] sm:$0xff] %v402_v34  ;;  %v408_v37 = vld [vmem:[%s3168_s11 + $0x858] sm:$0xff]  ;;  %405 = vst [vmem:[%s3173_s12 + $0x414] sm:$0xff] %v404_v35  ;;  %v410_v38 = vld [vmem:[%s3168_s11 + $0x870] sm:$0xff] }
  0x4b   : > { %407 = vst [vmem:[%s3173_s12 + $0x420] sm:$0xff] %v406_v36  ;;  %409 = vst [vmem:[%s3173_s12 + $0x42c] sm:$0xff] %v408_v37  ;;  %v412_v39 = vld [vmem:[%s3168_s11 + $0x888] sm:$0xff]  ;;  %v414_v40 = vld [vmem:[%s3168_s11 + $0x8a0] sm:$0xff] }
  0x4c   : > { %411 = vst [vmem:[%s3173_s12 + $0x438] sm:$0xff] %v410_v38  ;;  %413 = vst [vmem:[%s3173_s12 + $0x444] sm:$0xff] %v412_v39  ;;  %v416_v41 = vld [vmem:[%s3168_s11 + $0x8b8] sm:$0xff]  ;;  %v418_v42 = vld [vmem:[%s3168_s11 + $0x8d0] sm:$0xff] }
  0x4d   : > { %415 = vst [vmem:[%s3173_s12 + $0x450] sm:$0xff] %v414_v40  ;;  %v420_v43 = vld [vmem:[%s3168_s11 + $0x8e8] sm:$0xff]  ;;  %417 = vst [vmem:[%s3173_s12 + $0x45c] sm:$0xff] %v416_v41  ;;  %v2376_v45 = vld [vmem:[%s3168_s11 + $0x20] sm:$0xf] }
  0x4e   : > { %419 = vst [vmem:[%s3173_s12 + $0x468] sm:$0xff] %v418_v42  ;;  %421 = vst [vmem:[%s3173_s12 + $0x474] sm:$0xff] %v420_v43  ;;  %v2374_v44 = vld [vmem:[%s3168_s11 + $0x8] sm:$0xf]  ;;  %v2378_v46 = vld [vmem:[%s3168_s11 + $0x38] sm:$0xf] }
  0x4f   : > { %2375 = vst [vmem:[%s3173_s12 + $0x8] sm:$0xf] %v2374_v44  ;;  %2377 = vst [vmem:[%s3173_s12 + $0x14] sm:$0xf] %v2376_v45  ;;  %v2380_v47 = vld [vmem:[%s3168_s11 + $0x50] sm:$0xf] }
  0x50   : > { %2379 = vst [vmem:[%s3173_s12 + $0x20] sm:$0xf] %v2378_v46  ;;  %v2382_v48 = vld [vmem:[%s3168_s11 + $0x68] sm:$0xf]  ;;  %v2384_v49 = vld [vmem:[%s3168_s11 + $0x80] sm:$0xf] }
  0x51   : > { %2381 = vst [vmem:[%s3173_s12 + $0x2c] sm:$0xf] %v2380_v47  ;;  %2383 = vst [vmem:[%s3173_s12 + $0x38] sm:$0xf] %v2382_v48  ;;  %v2386_v50 = vld [vmem:[%s3168_s11 + $0x98] sm:$0xf] }
  0x52   : > { %2385 = vst [vmem:[%s3173_s12 + $0x44] sm:$0xf] %v2384_v49  ;;  %v2388_v51 = vld [vmem:[%s3168_s11 + $0xb0] sm:$0xf]  ;;  %v2390_v52 = vld [vmem:[%s3168_s11 + $0xc8] sm:$0xf] }
  0x53   : > { %2387 = vst [vmem:[%s3173_s12 + $0x50] sm:$0xf] %v2386_v50  ;;  %2389 = vst [vmem:[%s3173_s12 + $0x5c] sm:$0xf] %v2388_v51  ;;  %v2392_v53 = vld [vmem:[%s3168_s11 + $0xe0] sm:$0xf] }
  0x54   : > { %2391 = vst [vmem:[%s3173_s12 + $0x68] sm:$0xf] %v2390_v52  ;;  %v2394_v54 = vld [vmem:[%s3168_s11 + $0xf8] sm:$0xf]  ;;  %v2396_v55 = vld [vmem:[%s3168_s11 + $0x110] sm:$0xf] }
  0x55   : > { %2393 = vst [vmem:[%s3173_s12 + $0x74] sm:$0xf] %v2392_v53  ;;  %2395 = vst [vmem:[%s3173_s12 + $0x80] sm:$0xf] %v2394_v54  ;;  %v2398_v56 = vld [vmem:[%s3168_s11 + $0x128] sm:$0xf] }
  0x56   : > { %2397 = vst [vmem:[%s3173_s12 + $0x8c] sm:$0xf] %v2396_v55  ;;  %v2400_v57 = vld [vmem:[%s3168_s11 + $0x140] sm:$0xf]  ;;  %v2402_v58 = vld [vmem:[%s3168_s11 + $0x158] sm:$0xf] }
  0x57   : > { %2399 = vst [vmem:[%s3173_s12 + $0x98] sm:$0xf] %v2398_v56  ;;  %2401 = vst [vmem:[%s3173_s12 + $0xa4] sm:$0xf] %v2400_v57  ;;  %v2404_v59 = vld [vmem:[%s3168_s11 + $0x170] sm:$0xf] }
  0x58   : > { %2403 = vst [vmem:[%s3173_s12 + $0xb0] sm:$0xf] %v2402_v58  ;;  %v2406_v60 = vld [vmem:[%s3168_s11 + $0x188] sm:$0xf]  ;;  %v2408_v61 = vld [vmem:[%s3168_s11 + $0x1a0] sm:$0xf] }
  0x59   : > { %2405 = vst [vmem:[%s3173_s12 + $0xbc] sm:$0xf] %v2404_v59  ;;  %2407 = vst [vmem:[%s3173_s12 + $0xc8] sm:$0xf] %v2406_v60  ;;  %v2410_v62 = vld [vmem:[%s3168_s11 + $0x1b8] sm:$0xf] }
  0x5a   : > { %2409 = vst [vmem:[%s3173_s12 + $0xd4] sm:$0xf] %v2408_v61  ;;  %v2412_v63 = vld [vmem:[%s3168_s11 + $0x1d0] sm:$0xf]  ;;  %v2414_v0 = vld [vmem:[%s3168_s11 + $0x1e8] sm:$0xf] }
  0x5b   : > { %2411 = vst [vmem:[%s3173_s12 + $0xe0] sm:$0xf] %v2410_v62  ;;  %2413 = vst [vmem:[%s3173_s12 + $0xec] sm:$0xf] %v2412_v63  ;;  %v2416_v1 = vld [vmem:[%s3168_s11 + $0x200] sm:$0xf] }
  0x5c   : > { %2415 = vst [vmem:[%s3173_s12 + $0xf8] sm:$0xf] %v2414_v0  ;;  %v2418_v2 = vld [vmem:[%s3168_s11 + $0x218] sm:$0xf]  ;;  %v2420_v3 = vld [vmem:[%s3168_s11 + $0x230] sm:$0xf] }
  0x5d   : > { %2417 = vst [vmem:[%s3173_s12 + $0x104] sm:$0xf] %v2416_v1  ;;  %2419 = vst [vmem:[%s3173_s12 + $0x110] sm:$0xf] %v2418_v2  ;;  %v2422_v4 = vld [vmem:[%s3168_s11 + $0x248] sm:$0xf] }
  0x5e   : > { %2421 = vst [vmem:[%s3173_s12 + $0x11c] sm:$0xf] %v2420_v3  ;;  %v2424_v5 = vld [vmem:[%s3168_s11 + $0x260] sm:$0xf]  ;;  %v2426_v6 = vld [vmem:[%s3168_s11 + $0x278] sm:$0xf] }
  0x5f   : > { %2423 = vst [vmem:[%s3173_s12 + $0x128] sm:$0xf] %v2422_v4  ;;  %2425 = vst [vmem:[%s3173_s12 + $0x134] sm:$0xf] %v2424_v5  ;;  %v2428_v7 = vld [vmem:[%s3168_s11 + $0x290] sm:$0xf] }
  0x60   : > { %2427 = vst [vmem:[%s3173_s12 + $0x140] sm:$0xf] %v2426_v6  ;;  %v2430_v8 = vld [vmem:[%s3168_s11 + $0x2a8] sm:$0xf]  ;;  %v2432_v9 = vld [vmem:[%s3168_s11 + $0x2c0] sm:$0xf] }
  0x61   : > { %2429 = vst [vmem:[%s3173_s12 + $0x14c] sm:$0xf] %v2428_v7  ;;  %2431 = vst [vmem:[%s3173_s12 + $0x158] sm:$0xf] %v2430_v8  ;;  %v2434_v10 = vld [vmem:[%s3168_s11 + $0x2d8] sm:$0xf] }
  0x62   : > { %2433 = vst [vmem:[%s3173_s12 + $0x164] sm:$0xf] %v2432_v9  ;;  %v2436_v11 = vld [vmem:[%s3168_s11 + $0x2f0] sm:$0xf]  ;;  %v2438_v12 = vld [vmem:[%s3168_s11 + $0x308] sm:$0xf] }
  0x63   : > { %2435 = vst [vmem:[%s3173_s12 + $0x170] sm:$0xf] %v2434_v10  ;;  %2437 = vst [vmem:[%s3173_s12 + $0x17c] sm:$0xf] %v2436_v11  ;;  %v2440_v13 = vld [vmem:[%s3168_s11 + $0x320] sm:$0xf] }
  0x64   : > { %2439 = vst [vmem:[%s3173_s12 + $0x188] sm:$0xf] %v2438_v12  ;;  %v2442_v14 = vld [vmem:[%s3168_s11 + $0x338] sm:$0xf]  ;;  %v2444_v15 = vld [vmem:[%s3168_s11 + $0x350] sm:$0xf] }
  0x65   : > { %2441 = vst [vmem:[%s3173_s12 + $0x194] sm:$0xf] %v2440_v13  ;;  %2443 = vst [vmem:[%s3173_s12 + $0x1a0] sm:$0xf] %v2442_v14  ;;  %v2446_v16 = vld [vmem:[%s3168_s11 + $0x368] sm:$0xf] }
  0x66   : > { %2445 = vst [vmem:[%s3173_s12 + $0x1ac] sm:$0xf] %v2444_v15  ;;  %v2448_v17 = vld [vmem:[%s3168_s11 + $0x380] sm:$0xf]  ;;  %v2450_v18 = vld [vmem:[%s3168_s11 + $0x398] sm:$0xf] }
  0x67   : > { %2447 = vst [vmem:[%s3173_s12 + $0x1b8] sm:$0xf] %v2446_v16  ;;  %2449 = vst [vmem:[%s3173_s12 + $0x1c4] sm:$0xf] %v2448_v17  ;;  %v2452_v19 = vld [vmem:[%s3168_s11 + $0x3b0] sm:$0xf] }
  0x68   : > { %2451 = vst [vmem:[%s3173_s12 + $0x1d0] sm:$0xf] %v2450_v18  ;;  %v2454_v20 = vld [vmem:[%s3168_s11 + $0x3c8] sm:$0xf]  ;;  %v2456_v21 = vld [vmem:[%s3168_s11 + $0x3e0] sm:$0xf] }
  0x69   : > { %2453 = vst [vmem:[%s3173_s12 + $0x1dc] sm:$0xf] %v2452_v19  ;;  %2455 = vst [vmem:[%s3173_s12 + $0x1e8] sm:$0xf] %v2454_v20  ;;  %v2458_v22 = vld [vmem:[%s3168_s11 + $0x3f8] sm:$0xf] }
  0x6a   : > { %2457 = vst [vmem:[%s3173_s12 + $0x1f4] sm:$0xf] %v2456_v21  ;;  %v2460_v23 = vld [vmem:[%s3168_s11 + $0x410] sm:$0xf]  ;;  %v2462_v24 = vld [vmem:[%s3168_s11 + $0x428] sm:$0xf] }
  0x6b   : > { %2459 = vst [vmem:[%s3173_s12 + $0x200] sm:$0xf] %v2458_v22  ;;  %2461 = vst [vmem:[%s3173_s12 + $0x20c] sm:$0xf] %v2460_v23  ;;  %v2464_v25 = vld [vmem:[%s3168_s11 + $0x440] sm:$0xf] }
  0x6c   : > { %2463 = vst [vmem:[%s3173_s12 + $0x218] sm:$0xf] %v2462_v24  ;;  %v2466_v26 = vld [vmem:[%s3168_s11 + $0x458] sm:$0xf]  ;;  %v2468_v27 = vld [vmem:[%s3168_s11 + $0x470] sm:$0xf] }
  0x6d   : > { %2465 = vst [vmem:[%s3173_s12 + $0x224] sm:$0xf] %v2464_v25  ;;  %2467 = vst [vmem:[%s3173_s12 + $0x230] sm:$0xf] %v2466_v26  ;;  %v2470_v28 = vld [vmem:[%s3168_s11 + $0x488] sm:$0xf] }
  0x6e   : > { %2469 = vst [vmem:[%s3173_s12 + $0x23c] sm:$0xf] %v2468_v27  ;;  %v2472_v29 = vld [vmem:[%s3168_s11 + $0x4a0] sm:$0xf]  ;;  %v2474_v30 = vld [vmem:[%s3168_s11 + $0x4b8] sm:$0xf] }
  0x6f   : > { %2471 = vst [vmem:[%s3173_s12 + $0x248] sm:$0xf] %v2470_v28  ;;  %2473 = vst [vmem:[%s3173_s12 + $0x254] sm:$0xf] %v2472_v29  ;;  %v2476_v31 = vld [vmem:[%s3168_s11 + $0x4d0] sm:$0xf] }
  0x70   : > { %2475 = vst [vmem:[%s3173_s12 + $0x260] sm:$0xf] %v2474_v30  ;;  %v2478_v32 = vld [vmem:[%s3168_s11 + $0x4e8] sm:$0xf]  ;;  %v2480_v33 = vld [vmem:[%s3168_s11 + $0x500] sm:$0xf] }
  0x71   : > { %2477 = vst [vmem:[%s3173_s12 + $0x26c] sm:$0xf] %v2476_v31  ;;  %2479 = vst [vmem:[%s3173_s12 + $0x278] sm:$0xf] %v2478_v32  ;;  %v2482_v34 = vld [vmem:[%s3168_s11 + $0x518] sm:$0xf] }
  0x72   : > { %2481 = vst [vmem:[%s3173_s12 + $0x284] sm:$0xf] %v2480_v33  ;;  %v2484_v35 = vld [vmem:[%s3168_s11 + $0x530] sm:$0xf]  ;;  %v2486_v36 = vld [vmem:[%s3168_s11 + $0x548] sm:$0xf] }
  0x73   : > { %2483 = vst [vmem:[%s3173_s12 + $0x290] sm:$0xf] %v2482_v34  ;;  %2485 = vst [vmem:[%s3173_s12 + $0x29c] sm:$0xf] %v2484_v35  ;;  %v2488_v37 = vld [vmem:[%s3168_s11 + $0x560] sm:$0xf] }
  0x74   : > { %2487 = vst [vmem:[%s3173_s12 + $0x2a8] sm:$0xf] %v2486_v36  ;;  %v2490_v38 = vld [vmem:[%s3168_s11 + $0x578] sm:$0xf]  ;;  %v2492_v39 = vld [vmem:[%s3168_s11 + $0x590] sm:$0xf] }
  0x75   : > { %2489 = vst [vmem:[%s3173_s12 + $0x2b4] sm:$0xf] %v2488_v37  ;;  %2491 = vst [vmem:[%s3173_s12 + $0x2c0] sm:$0xf] %v2490_v38  ;;  %v2494_v40 = vld [vmem:[%s3168_s11 + $0x5a8] sm:$0xf] }
  0x76   : > { %2493 = vst [vmem:[%s3173_s12 + $0x2cc] sm:$0xf] %v2492_v39  ;;  %v2496_v41 = vld [vmem:[%s3168_s11 + $0x5c0] sm:$0xf]  ;;  %v2498_v42 = vld [vmem:[%s3168_s11 + $0x5d8] sm:$0xf] }
  0x77   : > { %2495 = vst [vmem:[%s3173_s12 + $0x2d8] sm:$0xf] %v2494_v40  ;;  %2497 = vst [vmem:[%s3173_s12 + $0x2e4] sm:$0xf] %v2496_v41  ;;  %v2500_v43 = vld [vmem:[%s3168_s11 + $0x5f0] sm:$0xf] }
  0x78   : > { %2499 = vst [vmem:[%s3173_s12 + $0x2f0] sm:$0xf] %v2498_v42  ;;  %v2502_v44 = vld [vmem:[%s3168_s11 + $0x608] sm:$0xf]  ;;  %v2504_v45 = vld [vmem:[%s3168_s11 + $0x620] sm:$0xf] }
  0x79   : > { %2501 = vst [vmem:[%s3173_s12 + $0x2fc] sm:$0xf] %v2500_v43  ;;  %2503 = vst [vmem:[%s3173_s12 + $0x308] sm:$0xf] %v2502_v44  ;;  %v2506_v46 = vld [vmem:[%s3168_s11 + $0x638] sm:$0xf] }
  0x7a   : > { %2505 = vst [vmem:[%s3173_s12 + $0x314] sm:$0xf] %v2504_v45  ;;  %v2508_v47 = vld [vmem:[%s3168_s11 + $0x650] sm:$0xf]  ;;  %v2510_v48 = vld [vmem:[%s3168_s11 + $0x668] sm:$0xf] }
  0x7b   : > { %2507 = vst [vmem:[%s3173_s12 + $0x320] sm:$0xf] %v2506_v46  ;;  %2509 = vst [vmem:[%s3173_s12 + $0x32c] sm:$0xf] %v2508_v47  ;;  %v2512_v49 = vld [vmem:[%s3168_s11 + $0x680] sm:$0xf] }
  0x7c   : > { %2511 = vst [vmem:[%s3173_s12 + $0x338] sm:$0xf] %v2510_v48  ;;  %v2514_v50 = vld [vmem:[%s3168_s11 + $0x698] sm:$0xf]  ;;  %v2516_v51 = vld [vmem:[%s3168_s11 + $0x6b0] sm:$0xf] }
  0x7d   : > { %2513 = vst [vmem:[%s3173_s12 + $0x344] sm:$0xf] %v2512_v49  ;;  %2515 = vst [vmem:[%s3173_s12 + $0x350] sm:$0xf] %v2514_v50  ;;  %v2518_v52 = vld [vmem:[%s3168_s11 + $0x6c8] sm:$0xf] }
  0x7e   : > { %2517 = vst [vmem:[%s3173_s12 + $0x35c] sm:$0xf] %v2516_v51  ;;  %v2520_v53 = vld [vmem:[%s3168_s11 + $0x6e0] sm:$0xf]  ;;  %v2522_v54 = vld [vmem:[%s3168_s11 + $0x6f8] sm:$0xf] }
  0x7f   : > { %2519 = vst [vmem:[%s3173_s12 + $0x368] sm:$0xf] %v2518_v52  ;;  %2521 = vst [vmem:[%s3173_s12 + $0x374] sm:$0xf] %v2520_v53  ;;  %v2524_v55 = vld [vmem:[%s3168_s11 + $0x710] sm:$0xf] }
  0x80   : > { %2523 = vst [vmem:[%s3173_s12 + $0x380] sm:$0xf] %v2522_v54  ;;  %v2526_v56 = vld [vmem:[%s3168_s11 + $0x728] sm:$0xf]  ;;  %v2528_v57 = vld [vmem:[%s3168_s11 + $0x740] sm:$0xf] }
  0x81   : > { %2525 = vst [vmem:[%s3173_s12 + $0x38c] sm:$0xf] %v2524_v55  ;;  %2527 = vst [vmem:[%s3173_s12 + $0x398] sm:$0xf] %v2526_v56  ;;  %v2530_v58 = vld [vmem:[%s3168_s11 + $0x758] sm:$0xf] }
  0x82   : > { %2529 = vst [vmem:[%s3173_s12 + $0x3a4] sm:$0xf] %v2528_v57  ;;  %v2532_v59 = vld [vmem:[%s3168_s11 + $0x770] sm:$0xf]  ;;  %v2534_v60 = vld [vmem:[%s3168_s11 + $0x788] sm:$0xf] }
  0x83   : > { %2531 = vst [vmem:[%s3173_s12 + $0x3b0] sm:$0xf] %v2530_v58  ;;  %2533 = vst [vmem:[%s3173_s12 + $0x3bc] sm:$0xf] %v2532_v59  ;;  %v2536_v61 = vld [vmem:[%s3168_s11 + $0x7a0] sm:$0xf] }
  0x84   : > { %2535 = vst [vmem:[%s3173_s12 + $0x3c8] sm:$0xf] %v2534_v60  ;;  %v2538_v62 = vld [vmem:[%s3168_s11 + $0x7b8] sm:$0xf]  ;;  %v2540_v63 = vld [vmem:[%s3168_s11 + $0x7d0] sm:$0xf] }
  0x85   : > { %2537 = vst [vmem:[%s3173_s12 + $0x3d4] sm:$0xf] %v2536_v61  ;;  %2539 = vst [vmem:[%s3173_s12 + $0x3e0] sm:$0xf] %v2538_v62  ;;  %v2542_v0 = vld [vmem:[%s3168_s11 + $0x7e8] sm:$0xf] }
  0x86   : > { %2541 = vst [vmem:[%s3173_s12 + $0x3ec] sm:$0xf] %v2540_v63  ;;  %v2544_v1 = vld [vmem:[%s3168_s11 + $0x800] sm:$0xf]  ;;  %v2546_v2 = vld [vmem:[%s3168_s11 + $0x818] sm:$0xf] }
  0x87   : > { %2543 = vst [vmem:[%s3173_s12 + $0x3f8] sm:$0xf] %v2542_v0  ;;  %2545 = vst [vmem:[%s3173_s12 + $0x404] sm:$0xf] %v2544_v1  ;;  %v2548_v3 = vld [vmem:[%s3168_s11 + $0x830] sm:$0xf] }
  0x88   : > { %2547 = vst [vmem:[%s3173_s12 + $0x410] sm:$0xf] %v2546_v2  ;;  %v2550_v4 = vld [vmem:[%s3168_s11 + $0x848] sm:$0xf]  ;;  %v2552_v5 = vld [vmem:[%s3168_s11 + $0x860] sm:$0xf] }
  0x89   : > { %2549 = vst [vmem:[%s3173_s12 + $0x41c] sm:$0xf] %v2548_v3  ;;  %2551 = vst [vmem:[%s3173_s12 + $0x428] sm:$0xf] %v2550_v4  ;;  %v2554_v6 = vld [vmem:[%s3168_s11 + $0x878] sm:$0xf] }
  0x8a   : > { %2553 = vst [vmem:[%s3173_s12 + $0x434] sm:$0xf] %v2552_v5  ;;  %v2556_v7 = vld [vmem:[%s3168_s11 + $0x890] sm:$0xf]  ;;  %v2558_v8 = vld [vmem:[%s3168_s11 + $0x8a8] sm:$0xf] }
  0x8b   : > { %2555 = vst [vmem:[%s3173_s12 + $0x440] sm:$0xf] %v2554_v6  ;;  %2557 = vst [vmem:[%s3173_s12 + $0x44c] sm:$0xf] %v2556_v7  ;;  %v2560_v9 = vld [vmem:[%s3168_s11 + $0x8c0] sm:$0xf] }
  0x8c   : > { %2559 = vst [vmem:[%s3173_s12 + $0x458] sm:$0xf] %v2558_v8  ;;  %v2562_v10 = vld [vmem:[%s3168_s11 + $0x8d8] sm:$0xf]  ;;  %v2564_v11 = vld [vmem:[%s3168_s11 + $0x8f0] sm:$0xf] }
  0x8d   : > { %2561 = vst [vmem:[%s3173_s12 + $0x464] sm:$0xf] %v2560_v9  ;;  %2563 = vst [vmem:[%s3173_s12 + $0x470] sm:$0xf] %v2562_v10 }
  0x8e   : > { %2565 = vst [vmem:[%s3173_s12 + $0x47c] sm:$0xf] %v2564_v11 }
  0x8f PF: > { %p2566_p7 = scmp.ge.s32.totalorder %s3087_s17, 1  ;;  %p634_p8 = scmp.lt.s32.totalorder %s3087_s17, 3 }
  0x91   : > { %p635_p9 = pnand %p2566_p7, %p634_p8 }
  0x92   : > { %s3559_s13 = sand.u32 (!%p635_p9), 1, %s3079_s15  }
  0x93   : > { %638 = sbr.rel (%p635_p9) target bundleno = 535 (0x217), region = 77 }
  0x94   : > { %s2847_s27 = smul.u32 (!%p635_p9), 1152, %s3559_s13 }
  0x95   : > { %s2846_s25 = smul.u32 (!%p635_p9), 96, %s3559_s13 }
  0x96   : > { %s3579_s15 = scalar_lea.vmem (!%p635_p9), [#allocation3], %s2847_s27  ;;  %s2848_s26 = smul.u32 (!%p635_p9), 240, %s3559_s13 }
  0x97   : > { %s643_s27 = scalar_lea.vmem (!%p635_p9), [#allocation2], %s2846_s25 }
  0x98   : > { %v690_v12 = vld [vmem:[%s4064_s0 + $0x8] sm:$0xff]  ;;  %v696_v13 = vld [vmem:[%s4064_s0 + $0x38] sm:$0xff]  ;;  %v2879_v22 = vld [vmem:[%s3579_s15 + $0x94] ss:$12 sps:$4 sm:$0xff]   ;;  %vm2083_vm0 = vcmask 1043456   ;;  %s3856_s13 = scalar_lea.vmem [#allocation4], %s2848_s26 }
  0x99   : > { %v692_v14 = vld [vmem:[%s4064_s0 + $0x18] sm:$0xff]  ;;  %v3571_v15 = vpack.c.bf16 %v696_v13, %v690_v12  ;;  %v698_v16 = vld [vmem:[%s4064_s0 + $0x48] sm:$0xff]  ;;  %v2881_v23 = vld [vmem:[%s3579_s15 + $0x214] ss:$12 sps:$4 sm:$0xff]   ;;  %s2725_s30 = smul.u32 (%p3149_p5), 24, %s3130_s18 }
  0x9a   : > { %v3576_v17 = vpack.c.bf16 %v698_v16, %v692_v14  ;;  %v2873_v18 = vld [vmem:[%s3579_s15 + $0xac] ss:$12 sps:$4 sm:$0xff]   ;;  %v2877_v20 = vld [vmem:[%s3579_s15 + $0xa8] ss:$12 sps:$4 sm:$0xff]   ;;  %v2883_v24 = vld [vmem:[%s3579_s15 + $0x90] ss:$12 sps:$4 sm:$0xff]  }
  0x9b   : > { %1746 = vmatprep.mubr.bf16.mxu0 %v3571_v15  ;;  %v2875_v19 = vld [vmem:[%s3579_s15 + $0x22c] ss:$12 sps:$4 sm:$0xff]   ;;  %1714 = vmatprep.subr.bf16.mxu0 %v2873_v18  ;;  %v2878_v21 = vld [vmem:[%s3579_s15 + $0x228] ss:$12 sps:$4 sm:$0xff]   ;;  %v2884_v25 = vld [vmem:[%s3579_s15 + $0x210] ss:$12 sps:$4 sm:$0xff]   ;;  %s3998_s6 = scalar_lea.vmem (%p3149_p5), %s4068_s4, %s2725_s30 }
  0x9c   : > { %1807 = vmatprep.mubr.bf16.mxu1 %v3576_v17  ;;  %1775 = vmatprep.subr.bf16.mxu1 %v2875_v19  ;;  %v2885_v26 = vld [vmem:[%s3579_s15 + $0x7c] ss:$12 sps:$4 sm:$0xff]   ;;  %v2889_v28 = vld [vmem:[%s3579_s15 + $0x78] ss:$12 sps:$4 sm:$0xff]   ;;  %v2895_v32 = vld [vmem:[%s3579_s15 + $0x60] ss:$12 sps:$4 sm:$0xff]  }
  0x9d   : > { %1715 = vmatpush1.bf16.msra.mxu0 %v2877_v20  ;;  %1776 = vmatpush1.bf16.msra.mxu1 %v2878_v21  ;;  %v2887_v27 = vld [vmem:[%s3579_s15 + $0x1fc] ss:$12 sps:$4 sm:$0xff]   ;;  %v2890_v29 = vld [vmem:[%s3579_s15 + $0x1f8] ss:$12 sps:$4 sm:$0xff]   ;;  %v2896_v33 = vld [vmem:[%s3579_s15 + $0x1e0] ss:$12 sps:$4 sm:$0xff]  }
  0x9e   : > { %1716 = vmatprep.subr.bf16.mxu0 %v2879_v22  ;;  %1777 = vmatprep.subr.bf16.mxu1 %v2881_v23  ;;  %v2891_v30 = vld [vmem:[%s3579_s15 + $0x64] ss:$12 sps:$4 sm:$0xff]   ;;  %v2897_v34 = vld [vmem:[%s3579_s15 + $0x4c] ss:$12 sps:$4 sm:$0xff]   ;;  %v2901_v36 = vld [vmem:[%s3579_s15 + $0x48] ss:$12 sps:$4 sm:$0xff]  }
  0x9f   : > { %v2893_v31 = vld [vmem:[%s3579_s15 + $0x1e4] ss:$12 sps:$4 sm:$0xff]   ;;  %v2899_v35 = vld [vmem:[%s3579_s15 + $0x1cc] ss:$12 sps:$4 sm:$0xff]   ;;  %v2902_v37 = vld [vmem:[%s3579_s15 + $0x1c8] ss:$12 sps:$4 sm:$0xff]  }
  0xa0   : > { %v2903_v38 = vld [vmem:[%s3579_s15 + $0x34] ss:$12 sps:$4 sm:$0xff]   ;;  %v2907_v40 = vld [vmem:[%s3579_s15 + $0x30] ss:$12 sps:$4 sm:$0xff]   ;;  %v2913_v44 = vld [vmem:[%s3579_s15 + $0x18] ss:$12 sps:$4 sm:$0xff]  }
  0xa1   : > { %1717 = vmatpush1.bf16.msra.mxu0 %v2883_v24  ;;  %1778 = vmatpush1.bf16.msra.mxu1 %v2884_v25  ;;  %v2905_v39 = vld [vmem:[%s3579_s15 + $0x1b4] ss:$12 sps:$4 sm:$0xff]   ;;  %v2908_v41 = vld [vmem:[%s3579_s15 + $0x1b0] ss:$12 sps:$4 sm:$0xff]   ;;  %v2914_v45 = vld [vmem:[%s3579_s15 + $0x198] ss:$12 sps:$4 sm:$0xff]  }
  0xa2   : > { %1718 = vmatprep.subr.bf16.mxu0 %v2885_v26  ;;  %1779 = vmatprep.subr.bf16.mxu1 %v2887_v27  ;;  %v2909_v42 = vld [vmem:[%s3579_s15 + $0x1c] ss:$12 sps:$4 sm:$0xff]   ;;  %v2915_v46 = vld [vmem:[%s3579_s15 + $0x4] ss:$12 sps:$4 sm:$0xff]   ;;  %v2919_v48 = vld [vmem:[%s3579_s15] ss:$12 sps:$4 sm:$0xff]  }
  0xa3   : > { %v2911_v43 = vld [vmem:[%s3579_s15 + $0x19c] ss:$12 sps:$4 sm:$0xff]   ;;  %v2917_v47 = vld [vmem:[%s3579_s15 + $0x184] ss:$12 sps:$4 sm:$0xff]   ;;  %v2920_v49 = vld [vmem:[%s3579_s15 + $0x180] ss:$12 sps:$4 sm:$0xff]  }
  0xa4   : > { %v2921_v50 = vld [vmem:[%s3579_s15 + $0x16c] ss:$12 sps:$4 sm:$0xff]   ;;  %v2925_v52 = vld [vmem:[%s3579_s15 + $0x168] ss:$12 sps:$4 sm:$0xff]   ;;  %v2931_v56 = vld [vmem:[%s3579_s15 + $0x150] ss:$12 sps:$4 sm:$0xff]  }
  0xa5   : > { %1719 = vmatpush1.bf16.msra.mxu0 %v2889_v28  ;;  %1780 = vmatpush1.bf16.msra.mxu1 %v2890_v29  ;;  %v2923_v51 = vld [vmem:[%s3579_s15 + $0x2ec] ss:$12 sps:$4 sm:$0xff]   ;;  %v2926_v53 = vld [vmem:[%s3579_s15 + $0x2e8] ss:$12 sps:$4 sm:$0xff]   ;;  %v2932_v57 = vld [vmem:[%s3579_s15 + $0x2d0] ss:$12 sps:$4 sm:$0xff]  }
  0xa6   : > { %1720 = vmatprep.subr.bf16.mxu0 %v2891_v30  ;;  %1781 = vmatprep.subr.bf16.mxu1 %v2893_v31  ;;  %v2927_v54 = vld [vmem:[%s3579_s15 + $0x154] ss:$12 sps:$4 sm:$0xff]   ;;  %v2933_v58 = vld [vmem:[%s3579_s15 + $0x13c] ss:$12 sps:$4 sm:$0xff]   ;;  %v2937_v60 = vld [vmem:[%s3579_s15 + $0x138] ss:$12 sps:$4 sm:$0xff]  }
  0xa7   : > { %v2929_v55 = vld [vmem:[%s3579_s15 + $0x2d4] ss:$12 sps:$4 sm:$0xff]   ;;  %v2935_v59 = vld [vmem:[%s3579_s15 + $0x2bc] ss:$12 sps:$4 sm:$0xff]   ;;  %v2938_v61 = vld [vmem:[%s3579_s15 + $0x2b8] ss:$12 sps:$4 sm:$0xff]  }
  0xa8   : > { %v2939_v62 = vld [vmem:[%s3579_s15 + $0x124] ss:$12 sps:$4 sm:$0xff]   ;;  %v2943_v0 = vld [vmem:[%s3579_s15 + $0x120] ss:$12 sps:$4 sm:$0xff]   ;;  %v2949_v4 = vld [vmem:[%s3579_s15 + $0x108] ss:$12 sps:$4 sm:$0xff]  }
  0xa9   : > { %1721 = vmatpush1.bf16.msra.mxu0 %v2895_v32  ;;  %1782 = vmatpush1.bf16.msra.mxu1 %v2896_v33  ;;  %v2941_v63 = vld [vmem:[%s3579_s15 + $0x2a4] ss:$12 sps:$4 sm:$0xff]   ;;  %v2944_v1 = vld [vmem:[%s3579_s15 + $0x2a0] ss:$12 sps:$4 sm:$0xff]   ;;  %v2950_v5 = vld [vmem:[%s3579_s15 + $0x288] ss:$12 sps:$4 sm:$0xff]  }
  0xaa   : > { %1722 = vmatprep.subr.bf16.mxu0 %v2897_v34  ;;  %1783 = vmatprep.subr.bf16.mxu1 %v2899_v35  ;;  %v2945_v2 = vld [vmem:[%s3579_s15 + $0x10c] ss:$12 sps:$4 sm:$0xff]   ;;  %v2951_v6 = vld [vmem:[%s3579_s15 + $0xf4] ss:$12 sps:$4 sm:$0xff]   ;;  %v2955_v8 = vld [vmem:[%s3579_s15 + $0xf0] ss:$12 sps:$4 sm:$0xff]  }
  0xab   : > { %v2947_v3 = vld [vmem:[%s3579_s15 + $0x28c] ss:$12 sps:$4 sm:$0xff]   ;;  %v2953_v7 = vld [vmem:[%s3579_s15 + $0x274] ss:$12 sps:$4 sm:$0xff]   ;;  %v2956_v9 = vld [vmem:[%s3579_s15 + $0x270] ss:$12 sps:$4 sm:$0xff]  }
  0xac   : > { %v2957_v10 = vld [vmem:[%s3579_s15 + $0xdc] ss:$12 sps:$4 sm:$0xff]   ;;  %v2961_v12 = vld [vmem:[%s3579_s15 + $0xd8] ss:$12 sps:$4 sm:$0xff]   ;;  %v695_v19 = vld [vmem:[%s4064_s0 + $0x30] sm:$0xff] }
  0xad   : > { %1723 = vmatpush1.bf16.msra.mxu0 %v2901_v36  ;;  %1784 = vmatpush1.bf16.msra.mxu1 %v2902_v37  ;;  %v2959_v11 = vld [vmem:[%s3579_s15 + $0x25c] ss:$12 sps:$4 sm:$0xff]   ;;  %v2962_v13 = vld [vmem:[%s3579_s15 + $0x258] ss:$12 sps:$4 sm:$0xff]   ;;  %v691_v20 = vld [vmem:[%s4064_s0 + $0x10] sm:$0xff] }
  0xae   : > { %1724 = vmatprep.subr.bf16.mxu0 %v2903_v38  ;;  %1785 = vmatprep.subr.bf16.mxu1 %v2905_v39  ;;  %v2963_v14 = vld [vmem:[%s3579_s15 + $0xc4] ss:$12 sps:$4 sm:$0xff]   ;;  %v2967_v22 = vld [vmem:[%s3579_s15 + $0xc0] ss:$12 sps:$4 sm:$0xff]   ;;  %v708_v27 = vld [vmem:[%s4064_s0 + $0x98] sm:$0xff] }
  0xaf   : > { %v2965_v16 = vld [vmem:[%s3579_s15 + $0x244] ss:$12 sps:$4 sm:$0xff]   ;;  %v2968_v23 = vld [vmem:[%s3579_s15 + $0x240] ss:$12 sps:$4 sm:$0xff]   ;;  %v2969_v28 = vld [vmem:[%s3579_s15 + $0x3a8] ss:$12 sps:$4 sm:$0xff]  }
  0xb0   : > { %v689_v18 = vld [vmem:[%s4064_s0] sm:$0xff]  ;;  %v2971_v24 = vld [vmem:[%s3579_s15 + $0x3ac] ss:$12 sps:$4 sm:$0xff]   ;;  %v2972_v25 = vld [vmem:[%s3579_s15 + $0x170] ss:$12 sps:$4 sm:$0xff]  }
  0xb1   : > { %1725 = vmatpush1.bf16.msra.mxu0 %v2907_v40  ;;  %1786 = vmatpush1.bf16.msra.mxu1 %v2908_v41  ;;  %v697_v21 = vld [vmem:[%s4064_s0 + $0x40] sm:$0xff]  ;;  %v702_v26 = vld [vmem:[%s4064_s0 + $0x68] sm:$0xff]  ;;  %v2973_v29 = vld [vmem:[%s3579_s15 + $0xb0] ss:$12 sps:$4 sm:$0xff]   ;;  %v3671_v31 = vpack.c.bf16 %v695_v19, %v689_v18 }
  0xb2   : > { %1726 = vmatprep.subr.bf16.mxu0 %v2909_v42  ;;  %1787 = vmatprep.subr.bf16.mxu1 %v2911_v43  ;;  %v704_v30 = vld [vmem:[%s4064_s0 + $0x78] sm:$0xff]  ;;  %v3673_v32 = vpack.c.bf16 %v697_v21, %v691_v20  ;;  %v710_v33 = vld [vmem:[%s4064_s0 + $0xa8] sm:$0xff]  ;;  %v2976_v34 = vld [vmem:[%s3579_s15 + $0x394] ss:$12 sps:$4 sm:$0xff]   ;;  %v3682_v38 = vpack.c.bf16 %v708_v27, %v702_v26 }
  0xb3   : > { %v2977_v35 = vld [vmem:[%s3579_s15 + $0x158] ss:$12 sps:$4 sm:$0xff]   ;;  %v2974_v36 = vld [vmem:[%s3579_s15 + $0x390] ss:$12 sps:$4 sm:$0xff]   ;;  %v3690_v41 = vpack.c.bf16 %v710_v33, %v704_v30  ;;  %v3016_v19 = vld [vmem:[%s3579_s15 + $0x454] ss:$12 sps:$4 sm:$0xff]  }
  0xb4   : > { %v2978_v37 = vld [vmem:[%s3579_s15 + $0x98] ss:$12 sps:$4 sm:$0xff]   ;;  %v707_v40 = vld [vmem:[%s4064_s0 + $0x90] sm:$0xff]  ;;  %v694_v21 = vld [vmem:[%s4064_s0 + $0x28] sm:$0xff] }
  0xb5   : > { %1727 = vmatpush1.bf16.msra.mxu0 %v2913_v44  ;;  %1788 = vmatpush1.bf16.msra.mxu1 %v2914_v45  ;;  %v701_v39 = vld [vmem:[%s4064_s0 + $0x60] sm:$0xff]  ;;  %v703_v42 = vld [vmem:[%s4064_s0 + $0x70] sm:$0xff]  ;;  %v2981_v44 = vld [vmem:[%s3579_s15 + $0x37c] ss:$12 sps:$4 sm:$0xff]  }
  0xb6   : > { %1728 = vmatprep.subr.bf16.mxu0 %v2915_v46  ;;  %1789 = vmatprep.subr.bf16.mxu1 %v2917_v47  ;;  %v709_v43 = vld [vmem:[%s4064_s0 + $0xa0] sm:$0xff]  ;;  %v3013_v18 = vld [vmem:[%s3579_s15 + $0x230] ss:$12 sps:$4 sm:$0xff]  }
  0xb7   : > { %v2982_v45 = vld [vmem:[%s3579_s15 + $0x140] ss:$12 sps:$4 sm:$0xff]   ;;  %v2979_v46 = vld [vmem:[%s3579_s15 + $0x378] ss:$12 sps:$4 sm:$0xff]  }
  0xb8   : > { %v2983_v47 = vld [vmem:[%s3579_s15 + $0x80] ss:$12 sps:$4 sm:$0xff]   ;;  %v3017_v20 = vld [vmem:[%s3579_s15 + $0x2d8] ss:$12 sps:$4 sm:$0xff]  }
  0xb9   : > { %1729 = vmatpush1.bf16.msra.mxu0 %v2919_v48  ;;  %1790 = vmatpush1.bf16.msra.mxu1 %v2920_v49  ;;  %v716_v48 = vld [vmem:[%s4064_s0 + $0xd8] sm:$0xff]  ;;  %v3709_v49 = vpack.c.bf16 %v707_v40, %v701_v39  ;;  %v3022_v27 = vld [vmem:[%s3579_s15 + $0x2c0] ss:$12 sps:$4 sm:$0xff]   ;;  %v3026_v30 = vld [vmem:[%s3579_s15 + $0x424] ss:$12 sps:$4 sm:$0xff]  }
  0xba   : > { %1730 = vmatprep.subr.bf16.mxu0 %v2921_v50  ;;  %1791 = vmatprep.subr.bf16.mxu1 %v2923_v51  ;;  %v3711_v50 = vpack.c.bf16 %v709_v43, %v703_v42  ;;  %v714_v51 = vld [vmem:[%s4064_s0 + $0xc8] sm:$0xff]  ;;  %v3036_v39 = vld [vmem:[%s3579_s15 + $0x3f4] ss:$12 sps:$4 sm:$0xff]   ;;  %v3037_v40 = vld [vmem:[%s3579_s15 + $0x278] ss:$12 sps:$4 sm:$0xff]  }
  0xbb   : > { %v3024_v33 = vld [vmem:[%s3579_s15 + $0x420] ss:$12 sps:$4 sm:$0xff]   ;;  %v3034_v42 = vld [vmem:[%s3579_s15 + $0x3f0] ss:$12 sps:$4 sm:$0xff]   ;;  %v3038_v43 = vld [vmem:[%s3579_s15 + $0x1b8] ss:$12 sps:$4 sm:$0xff]  }
  0xbd   : > { %1731 = vmatpush2.bf16.msra.mxu0 %v2925_v52  ;;  %1792 = vmatpush2.bf16.msra.mxu1 %v2926_v53  ;;  %v2986_v52 = vld [vmem:[%s3579_s15 + $0x364] ss:$12 sps:$4 sm:$0xff]   ;;  %v2987_v53 = vld [vmem:[%s3579_s15 + $0x128] ss:$12 sps:$4 sm:$0xff]  }
  0xbe   : > { %1732 = vmatprep.subr.bf16.mxu0 %v2927_v54  ;;  %1793 = vmatprep.subr.bf16.mxu1 %v2929_v55  ;;  %v2984_v54 = vld [vmem:[%s3579_s15 + $0x360] ss:$12 sps:$4 sm:$0xff]   ;;  %v2988_v55 = vld [vmem:[%s3579_s15 + $0x68] ss:$12 sps:$4 sm:$0xff]  }
  0xc1   : > { %1733 = vmatpush2.bf16.msra.mxu0 %v2931_v56  ;;  %1794 = vmatpush2.bf16.msra.mxu1 %v2932_v57  ;;  %v3720_v56 = vpack.c.bf16 %v716_v48, %v716_v48  ;;  %v3722_v57 = vpack.c.bf16 %v714_v51, %v714_v51  ;;  %v3046_v48 = vld [vmem:[%s3579_s15 + $0x3c4] ss:$12 sps:$4 sm:$0xff]   ;;  %v3044_v51 = vld [vmem:[%s3579_s15 + $0x3c0] ss:$12 sps:$4 sm:$0xff]  }
  0xc2   : > { %1734 = vmatprep.subr.bf16.mxu0 %v2933_v58  ;;  %1795 = vmatprep.subr.bf16.mxu1 %v2935_v59  ;;  %v2991_v58 = vld [vmem:[%s3579_s15 + $0x34c] ss:$12 sps:$4 sm:$0xff]   ;;  %v715_v59 = vld [vmem:[%s4064_s0 + $0xd0] sm:$0xff] }
  0xc5   : > { %1735 = vmatpush2.bf16.msra.mxu0 %v2937_v60  ;;  %1796 = vmatpush2.bf16.msra.mxu1 %v2938_v61  ;;  %v713_v60 = vld [vmem:[%s4064_s0 + $0xc0] sm:$0xff]  ;;  %v2992_v61 = vld [vmem:[%s3579_s15 + $0x110] ss:$12 sps:$4 sm:$0xff]  }
  0xc6   : > { %1736 = vmatprep.subr.bf16.mxu0 %v2939_v62  ;;  %1797 = vmatprep.subr.bf16.mxu1 %v2941_v63  ;;  %v2989_v62 = vld [vmem:[%s3579_s15 + $0x348] ss:$12 sps:$4 sm:$0xff]   ;;  %v2993_v63 = vld [vmem:[%s3579_s15 + $0x50] ss:$12 sps:$4 sm:$0xff]  }
  0xc9   : > { %1737 = vmatpush2.bf16.msra.mxu0 %v2943_v0  ;;  %1798 = vmatpush2.bf16.msra.mxu1 %v2944_v1  ;;  %v3738_v0 = vpack.c.bf16 %v715_v59, %v715_v59  ;;  %v3740_v1 = vpack.c.bf16 %v713_v60, %v713_v60  ;;  %v3050_v59 = vld [vmem:[%s3579_s15 + $0x3b0] ss:$12 sps:$4 sm:$0xff]   ;;  %v3051_v60 = vld [vmem:[%s3579_s15 + $0x458] ss:$12 sps:$4 sm:$0xff]  }
  0xca   : > { %1738 = vmatprep.subr.bf16.mxu0 %v2945_v2  ;;  %1799 = vmatprep.subr.bf16.mxu1 %v2947_v3  ;;  %v2996_v2 = vld [vmem:[%s3579_s15 + $0x334] ss:$12 sps:$4 sm:$0xff]   ;;  %v2997_v3 = vld [vmem:[%s3579_s15 + $0xf8] ss:$12 sps:$4 sm:$0xff]  }
  0xcd   : > { %1739 = vmatpush2.bf16.msra.mxu0 %v2949_v4  ;;  %1800 = vmatpush2.bf16.msra.mxu1 %v2950_v5  ;;  %v2994_v4 = vld [vmem:[%s3579_s15 + $0x330] ss:$12 sps:$4 sm:$0xff]   ;;  %v2998_v5 = vld [vmem:[%s3579_s15 + $0x38] ss:$12 sps:$4 sm:$0xff]  }
  0xce   : > { %1740 = vmatprep.subr.bf16.mxu0 %v2951_v6  ;;  %1801 = vmatprep.subr.bf16.mxu1 %v2953_v7  ;;  %v3001_v6 = vld [vmem:[%s3579_s15 + $0x31c] ss:$12 sps:$4 sm:$0xff]   ;;  %v3002_v7 = vld [vmem:[%s3579_s15 + $0xe0] ss:$12 sps:$4 sm:$0xff]  }
  0xd1   : > { %1741 = vmatpush2.bf16.msra.mxu0 %v2955_v8  ;;  %1802 = vmatpush2.bf16.msra.mxu1 %v2956_v9  ;;  %v2999_v8 = vld [vmem:[%s3579_s15 + $0x318] ss:$12 sps:$4 sm:$0xff]   ;;  %v3003_v9 = vld [vmem:[%s3579_s15 + $0x20] ss:$12 sps:$4 sm:$0xff]  }
  0xd2   : > { %1742 = vmatprep.subr.bf16.mxu0 %v2957_v10  ;;  %1803 = vmatprep.subr.bf16.mxu1 %v2959_v11  ;;  %v3006_v10 = vld [vmem:[%s3579_s15 + $0x304] ss:$12 sps:$4 sm:$0xff]   ;;  %v3007_v11 = vld [vmem:[%s3579_s15 + $0xc8] ss:$12 sps:$4 sm:$0xff]  }
  0xd5   : > { %1743 = vmatpush2.bf16.msra.mxu0 %v2961_v12  ;;  %1804 = vmatpush2.bf16.msra.mxu1 %v2962_v13  ;;  %v3004_v12 = vld [vmem:[%s3579_s15 + $0x300] ss:$12 sps:$4 sm:$0xff]   ;;  %v3008_v13 = vld [vmem:[%s3579_s15 + $0x8] ss:$12 sps:$4 sm:$0xff]  }
  0xd6   : > { %1744 = vmatprep.subr.bf16.mxu0 %v2963_v14  ;;  %1805 = vmatprep.subr.bf16.mxu1 %v2965_v16  ;;  %v3012_v14 = vld [vmem:[%s3579_s15 + $0x2f0] ss:$12 sps:$4 sm:$0xff]   ;;  %v3009_v16 = vld [vmem:[%s3579_s15 + $0x468] ss:$12 sps:$4 sm:$0xff]  }
  0xd9   : > { %1745 = vmatpush2.bf16.msra.mxu0 %v2967_v22  ;;  %1806 = vmatpush2.bf16.msra.mxu1 %v2968_v23  ;;  %v3014_v22 = vld [vmem:[%s3579_s15 + $0x450] ss:$12 sps:$4 sm:$0xff]   ;;  %v3018_v23 = vld [vmem:[%s3579_s15 + $0x218] ss:$12 sps:$4 sm:$0xff]  }
  0xda   : > { %1836 = vmatprep.subr.bf16.mxu0 %v2971_v24  ;;  %2726 = vmatprep.subr.bf16.mxu1 %v2972_v25  ;;  %v700_v24 = vld [vmem:[%s4064_s0 + $0x58] sm:$0xff] }
  0xdb   : > { %v3021_v25 = vld [vmem:[%s3579_s15 + $0x43c] ss:$12 sps:$4 sm:$0xff]   ;;  %v3773_v26 = vpack.c.bf16 %v700_v24, %v694_v21  ;;  %v2124_v24 = vld [vmem:[%s643_s27 + $0x30] sm:$0xff] }
  0xdc   : > { %1747 = vmatmul.mubr.bf16.vlgmr.msra.gmra.mxu0 %v3671_v31  ;;  %1808 = vmatmul.mubr.bf16.vlgmr.msra.gmra.mxu1 %v3673_v32 }
  0xdd   : > { %1837 = vmatpush1.bf16.msra.mxu0 %v2969_v28  ;;  %2727 = vmatpush3.bf16.msra.mxu1 %v2973_v29  ;;  %v3019_v28 = vld [vmem:[%s3579_s15 + $0x438] ss:$12 sps:$4 sm:$0xff]   ;;  %v3023_v29 = vld [vmem:[%s3579_s15 + $0x200] ss:$12 sps:$4 sm:$0xff]  }
  0xde   : > { %1838 = vmatprep.subr.bf16.mxu0 %v2976_v34  ;;  %2728 = vmatprep.subr.bf16.mxu1 %v2977_v35  ;;  %v3028_v34 = vld [vmem:[%s3579_s15 + $0x1e8] ss:$12 sps:$4 sm:$0xff]   ;;  %v3031_v35 = vld [vmem:[%s3579_s15 + $0x40c] ss:$12 sps:$4 sm:$0xff]  }
  0xdf   : > { %1756 = vmatprep.mubr.bf16.mxu0 %v3682_v38  ;;  %1817 = vmatprep.mubr.bf16.mxu1 %v3690_v41 }
  0xe1   : > { %1839 = vmatpush1.bf16.msra.mxu0 %v2974_v36  ;;  %2729 = vmatpush3.bf16.msra.mxu1 %v2978_v37  ;;  %v3032_v36 = vld [vmem:[%s3579_s15 + $0x290] ss:$12 sps:$4 sm:$0xff]   ;;  %v3029_v37 = vld [vmem:[%s3579_s15 + $0x408] ss:$12 sps:$4 sm:$0xff]  }
  0xe2   : > { %1840 = vmatprep.subr.bf16.mxu0 %v2981_v44  ;;  %2730 = vmatprep.subr.bf16.mxu1 %v2982_v45  ;;  %v3041_v44 = vld [vmem:[%s3579_s15 + $0x3dc] ss:$12 sps:$4 sm:$0xff]   ;;  %v3042_v45 = vld [vmem:[%s3579_s15 + $0x260] ss:$12 sps:$4 sm:$0xff]  }
  0xe4   : > { %1757 = vmatmul.mubr.bf16.gmra.mxu0 %v3709_v49  ;;  %1818 = vmatmul.mubr.bf16.gmra.mxu1 %v3711_v50 }
  0xe5   : > { %1841 = vmatpush1.bf16.msra.mxu0 %v2979_v46  ;;  %2731 = vmatpush3.bf16.msra.mxu1 %v2983_v47  ;;  %v3039_v46 = vld [vmem:[%s3579_s15 + $0x3d8] ss:$12 sps:$4 sm:$0xff]   ;;  %v3043_v47 = vld [vmem:[%s3579_s15 + $0x1a0] ss:$12 sps:$4 sm:$0xff]  }
  0xe6   : > { %1842 = vmatprep.subr.bf16.mxu0 %v2986_v52  ;;  %2732 = vmatprep.subr.bf16.mxu1 %v2987_v53  ;;  %v3048_v52 = vld [vmem:[%s3579_s15 + $0x188] ss:$12 sps:$4 sm:$0xff]   ;;  %v693_v53 = vld [vmem:[%s4064_s0 + $0x20] sm:$0xff] }
  0xe7   : > { %1827 = vmatprep.mubr.bf16.mxu1 %v3720_v56  ;;  %1766 = vmatprep.mubr.bf16.mxu0 %v3722_v57 }
  0xe9   : > { %1843 = vmatpush1.bf16.msra.mxu0 %v2984_v54  ;;  %2733 = vmatpush3.bf16.msra.mxu1 %v2988_v55  ;;  %v3049_v54 = vld [vmem:[%s3579_s15 + $0x470] ss:$12 sps:$4 sm:$0xff]  }
  0xea   : > { %1844 = vmatprep.subr.bf16.mxu0 %v2991_v58  ;;  %2734 = vmatprep.subr.bf16.mxu1 %v2992_v61  ;;  %v712_v58 = vld [vmem:[%s4064_s0 + $0xb8] sm:$0xff] }
  0xec   : > { %1828 = vmatmul.mubr.bf16.gmra.mxu1 %v3738_v0  ;;  %1767 = vmatmul.mubr.bf16.gmra.mxu0 %v3740_v1 }
  0xed   : > { %1845 = vmatpush1.bf16.msra.mxu0 %v2989_v62  ;;  %2735 = vmatpush3.bf16.msra.mxu1 %v2993_v63  ;;  %v3052_v62 = vld [vmem:[%s3579_s15 + $0x398] ss:$12 sps:$4 sm:$0xff]  }
  0xee   : > { %1846 = vmatprep.subr.bf16.mxu0 %v2996_v2  ;;  %2736 = vmatprep.subr.bf16.mxu1 %v2997_v3  ;;  %v705_v63 = vld [vmem:[%s4064_s0 + $0x80] sm:$0xff]  ;;  %v718_v3 = vld [vmem:[%s4064_s0 + $0xe8] sm:$0xff] }
  0xef   : > { %1929 = vmatprep.mubr.bf16.mxu1 %v3571_v15  ;;  %v3011_v15 = vld [vmem:[%s3579_s15 + $0x46c] ss:$12 sps:$4 sm:$0xff]   ;;  %1868 = vmatprep.mubr.bf16.mxu0 %v3773_v26 }
  0xf0   : > { %v3053_v2 = vld [vmem:[%s3579_s15 + $0x440] ss:$12 sps:$4 sm:$0xff]  }
  0xf1   : > { %1847 = vmatpush1.bf16.msra.mxu0 %v2994_v4  ;;  %2737 = vmatpush3.bf16.msra.mxu1 %v2998_v5  ;;  %v3054_v4 = vld [vmem:[%s3579_s15 + $0x380] ss:$12 sps:$4 sm:$0xff]   ;;  %v3055_v5 = vld [vmem:[%s3579_s15 + $0x428] ss:$12 sps:$4 sm:$0xff]  }
  0xf2   : > { %1848 = vmatprep.subr.bf16.mxu0 %v3001_v6  ;;  %2738 = vmatprep.subr.bf16.mxu1 %v3002_v7  ;;  %v736_v6 = vpack.c.bf16 %v718_v3, %v718_v3  ;;  %v717_v7 = vld [vmem:[%s4064_s0 + $0xe0] sm:$0xff] }
  0xf5   : > { %1849 = vmatpush1.bf16.msra.mxu0 %v2999_v8  ;;  %2739 = vmatpush3.bf16.msra.mxu1 %v3003_v9  ;;  %v3057_v8 = vld [vmem:[%s3579_s15 + $0x410] ss:$12 sps:$4 sm:$0xff]   ;;  %v735_v9 = vpack.c.bf16 %v717_v7, %v717_v7 }
  0xf6   : > { %1850 = vmatprep.subr.bf16.mxu0 %v3006_v10  ;;  %2740 = vmatprep.subr.bf16.mxu1 %v3007_v11  ;;  %v3059_v10 = vld [vmem:[%s3579_s15 + $0x3f8] ss:$12 sps:$4 sm:$0xff]  }
  0xf7   : > { %v3060_v11 = vld [vmem:[%s3579_s15 + $0x338] ss:$12 sps:$4 sm:$0xff]  }
  0xf9   : > { %1851 = vmatpush1.bf16.msra.mxu0 %v3004_v12  ;;  %2741 = vmatpush3.bf16.msra.mxu1 %v3008_v13  ;;  %v3061_v12 = vld [vmem:[%s3579_s15 + $0x3e0] ss:$12 sps:$4 sm:$0xff]   ;;  %v3063_v13 = vld [vmem:[%s3579_s15 + $0x3c8] ss:$12 sps:$4 sm:$0xff]  }
  0xfa   : > { %1852 = vmatprep.subr.bf16.mxu0 %v3011_v15  ;;  %2760 = vmatprep.subr.bf16.mxu1 %v3012_v14  ;;  %v2118_v15 = vld [vmem:[%s643_s27] sm:$0xff]  ;;  %v2119_v14 = vld [vmem:[%s643_s27 + $0x8] sm:$0xff] }
  0xfb   : > { %v2142_v21 = vrot.slane %v2118_v15, 4 }
  0xfc   : > { %1930 = vmatmul.mubr.bf16.vlgmr.msra.gmra.mxu1 %v3671_v31  ;;  %v3027_v31 = vld [vmem:[%s3579_s15 + $0x2a8] ss:$12 sps:$4 sm:$0xff]  }
  0xfd   : > { %1853 = vmatpush2.bf16.msra.mxu0 %v3009_v16  ;;  %2761 = vmatpush3.bf16.msra.mxu1 %v3013_v18  ;;  %v2120_v16 = vld [vmem:[%s643_s27 + $0x10] sm:$0xff]  ;;  %v2121_v18 = vld [vmem:[%s643_s27 + $0x18] sm:$0xff]  ;;  %2178 = vst [vmem:[%s3856_s13 + $0x30] sm:$0xf0] %v2142_v21 }
  0xfe   : > { %1854 = vmatprep.subr.bf16.mxu0 %v3016_v19  ;;  %2762 = vmatprep.subr.bf16.mxu1 %v3017_v20  ;;  %v2122_v19 = vld [vmem:[%s643_s27 + $0x20] sm:$0xff]  ;;  %v2123_v20 = vld [vmem:[%s643_s27 + $0x28] sm:$0xff] }
  0xff   : > { %1937 = vmatprep.mubr.bf16.mxu1 %v3682_v38  ;;  %v3033_v38 = vld [vmem:[%s3579_s15 + $0x1d0] ss:$12 sps:$4 sm:$0xff]  }
 0x101   : > { %1855 = vmatpush2.bf16.msra.mxu0 %v3014_v22  ;;  %2763 = vmatpush3.bf16.msra.mxu1 %v3018_v23  ;;  %v2143_v22 = vrot.slane %v2119_v14, 4  ;;  %v2144_v23 = vrot.slane %v2120_v16, 4 }
 0x102   : > { %1856 = vmatprep.subr.bf16.mxu0 %v3021_v25  ;;  %2764 = vmatprep.subr.bf16.mxu1 %v3022_v27  ;;  %v2125_v25 = vld [vmem:[%s643_s27 + $0x38] sm:$0xff]  ;;  %v2145_v27 = vrot.slane %v2121_v18, 4 }
 0x103   : > { %2179 = vst [vmem:[%s3856_s13 + $0x38] sm:$0xf0] %v2143_v22  ;;  %2180 = vst [vmem:[%s3856_s13 + $0x40] sm:$0xf0] %v2144_v23 }
 0x104   : > { %1938 = vmatmul.mubr.bf16.gmra.mxu1 %v3709_v49  ;;  %v3047_v49 = vld [vmem:[%s3579_s15 + $0x248] ss:$12 sps:$4 sm:$0xff]   ;;  %2184 = vst [vmem:[%s3856_s13 + $0x60] sm:$0xf] %v2145_v27 }
 0x105   : > { %1857 = vmatpush2.bf16.msra.mxu0 %v3019_v28  ;;  %2765 = vmatpush3.bf16.msra.mxu1 %v3023_v29  ;;  %v2147_v28 = vrot.slane %v2122_v19, 4  ;;  %v2149_v29 = vrot.slane %v2123_v20, 4 }
 0x106   : > { %1858 = vmatprep.subr.bf16.mxu0 %v3026_v30  ;;  %2766 = vmatprep.subr.bf16.mxu1 %v3027_v31  ;;  %v2127_v30 = vld [vmem:[%s643_s27 + $0x48] sm:$0xff]  ;;  %v2128_v31 = vld [vmem:[%s643_s27 + $0x50] sm:$0xff] }
 0x107   : > { %1945 = vmatprep.mubr.bf16.mxu1 %v3722_v57  ;;  %v706_v57 = vld [vmem:[%s4064_s0 + $0x88] sm:$0xff]  ;;  %2185 = vst [vmem:[%s3856_s13 + $0x68] sm:$0xf] %v2147_v28  ;;  %2186 = vst [vmem:[%s3856_s13 + $0x70] sm:$0xf] %v2149_v29 }
 0x108   : > { %v730_v61 = vpack.c.bf16 %v712_v58, %v706_v57 }
 0x109   : > { %1859 = vmatpush2.bf16.msra.mxu0 %v3024_v33  ;;  %2767 = vmatpush3.bf16.msra.mxu1 %v3028_v34  ;;  %v2129_v33 = vld [vmem:[%s643_s27 + $0x58] sm:$0xff]  ;;  %v2151_v34 = vrot.slane %v2124_v24, 4 }
 0x10a   : > { %1860 = vmatprep.subr.bf16.mxu0 %v3031_v35  ;;  %2768 = vmatprep.subr.bf16.mxu1 %v3032_v36  ;;  %v2152_v35 = vrot.slane %v2125_v25, 4 }
 0x10b   : > { %2187 = vst [vmem:[%s3856_s13 + $0xa8] sm:$0xf0] %v2151_v34 }
 0x10c   : > { %1946 = vmatmul.mubr.bf16.gmra.mxu1 %v3740_v1  ;;  %v711_v1 = vld [vmem:[%s4064_s0 + $0xb0] sm:$0xff]  ;;  %2188 = vst [vmem:[%s3856_s13 + $0xb0] sm:$0xf0] %v2152_v35 }
 0x10d   : > { %1861 = vmatpush2.bf16.msra.mxu0 %v3029_v37  ;;  %2769 = vmatpush3.bf16.msra.mxu1 %v3033_v38  ;;  %v2146_v37 = vsel %vm2083_vm0, %v2142_v21, %v2145_v27  ;;  %v2148_v38 = vsel %vm2083_vm0, %v2143_v22, %v2147_v28 }
 0x10e   : > { %1862 = vmatprep.subr.bf16.mxu0 %v3036_v39  ;;  %2770 = vmatprep.subr.bf16.mxu1 %v3037_v40  ;;  %v2150_v39 = vsel %vm2083_vm0, %v2144_v23, %v2149_v29  ;;  %v2154_v40 = vrot.slane %v2127_v30, 4  ;;  %2181 = vst [vmem:[%s3856_s13 + $0x48] sm:$0xff] %v2146_v37  ;;  %2182 = vst [vmem:[%s3856_s13 + $0x50] sm:$0xff] %v2148_v38 }
 0x10f   : > { %1985 = vmatprep.mubr.bf16.mxu1 %v3576_v17  ;;  %v699_v17 = vld [vmem:[%s4064_s0 + $0x50] sm:$0xff]  ;;  %2183 = vst [vmem:[%s3856_s13 + $0x58] sm:$0xff] %v2150_v39 }
 0x110   : > { %v3811_v55 = vpack.c.bf16 %v699_v17, %v693_v53  ;;  %2193 = vst [vmem:[%s3856_s13 + $0xd8] sm:$0xf] %v2154_v40 }
 0x111   : > { %1863 = vmatpush2.bf16.msra.mxu0 %v3034_v42  ;;  %2771 = vmatpush3.bf16.msra.mxu1 %v3038_v43  ;;  %v2156_v42 = vrot.slane %v2128_v31, 4  ;;  %v2158_v43 = vrot.slane %v2129_v33, 4 }
 0x112   : > { %1864 = vmatprep.subr.bf16.mxu0 %v3041_v44  ;;  %2772 = vmatprep.subr.bf16.mxu1 %v3042_v45  ;;  %v2155_v44 = vsel %vm2083_vm0, %v2151_v34, %v2154_v40 }
 0x113   : > { %v2157_v45 = vsel %vm2083_vm0, %v2152_v35, %v2156_v42  ;;  %2190 = vst [vmem:[%s3856_s13 + $0xc0] sm:$0xff] %v2155_v44  ;;  %2194 = vst [vmem:[%s3856_s13 + $0xe0] sm:$0xf] %v2156_v42 }
 0x114   : > { %2195 = vst [vmem:[%s3856_s13 + $0xe8] sm:$0xf] %v2158_v43  ;;  %2191 = vst [vmem:[%s3856_s13 + $0xc8] sm:$0xff] %v2157_v45 }
 0x115   : > { %1865 = vmatpush2.bf16.msra.mxu0 %v3039_v46  ;;  %2773 = vmatpush3.bf16.msra.mxu1 %v3043_v47 }
 0x116   : > { %1866 = vmatprep.subr.bf16.mxu0 %v3046_v48  ;;  %2774 = vmatprep.subr.bf16.mxu1 %v3047_v49 }
 0x119   : > { %1867 = vmatpush2.bf16.msra.mxu0 %v3044_v51  ;;  %2775 = vmatpush3.bf16.msra.mxu1 %v3048_v52 }
 0x11a   : > { %2794 = vmatprep.subr.bf16.mxu0 %v3049_v54  ;;  %2828 = vmatprep.subr.bf16.mxu1 %v3049_v54 }
 0x11c   : > { %1869 = vmatmul.mubr.bf16.vlgmr.msra.gmra.mxu0 %v3811_v55  ;;  %1986 = vmatmul.mubr.bf16.vlgmr.msra.gmra.mxu1 %v3673_v32  ;;  %v729_v32 = vpack.c.bf16 %v711_v1, %v705_v63 }
 0x11d   : > { %2795 = vmatpush3.bf16.msra.mxu0 %v3050_v59  ;;  %2836 = vmatpush3.bf16.msra.mxu1 %v3050_v59 }
 0x11e   : > { %2796 = vmatprep.subr.bf16.mxu0 %v3051_v60  ;;  %2829 = vmatprep.subr.bf16.mxu1 %v3051_v60 }
 0x11f   : > { %1878 = vmatprep.mubr.bf16.mxu0 %v730_v61  ;;  %1993 = vmatprep.mubr.bf16.mxu1 %v3690_v41  ;;  %v3056_v41 = vld [vmem:[%s3579_s15 + $0x368] ss:$12 sps:$4 sm:$0xff]  }
 0x121   : > { %2797 = vmatpush3.bf16.msra.mxu0 %v3052_v62  ;;  %2837 = vmatpush3.bf16.msra.mxu1 %v3052_v62 }
 0x122   : > { %2798 = vmatprep.subr.bf16.mxu0 %v3053_v2  ;;  %2830 = vmatprep.subr.bf16.mxu1 %v3053_v2 }
 0x124   : > { %1879 = vmatmul.mubr.bf16.gmra.mxu0 %v729_v32  ;;  %1994 = vmatmul.mubr.bf16.gmra.mxu1 %v3711_v50  ;;  %v3058_v50 = vld [vmem:[%s3579_s15 + $0x350] ss:$12 sps:$4 sm:$0xff]  }
 0x125   : > { %2799 = vmatpush3.bf16.msra.mxu0 %v3054_v4  ;;  %2838 = vmatpush3.bf16.msra.mxu1 %v3054_v4 }
 0x126   : > { %2800 = vmatprep.subr.bf16.mxu0 %v3055_v5  ;;  %2831 = vmatprep.subr.bf16.mxu1 %v3055_v5 }
 0x127   : > { %1888 = vmatprep.mubr.bf16.mxu0 %v736_v6  ;;  %2001 = vmatprep.mubr.bf16.mxu1 %v3720_v56  ;;  %v3062_v56 = vld [vmem:[%s3579_s15 + $0x320] ss:$12 sps:$4 sm:$0xff]  }
 0x129   : > { %2801 = vmatpush3.bf16.msra.mxu0 %v3056_v41  ;;  %2839 = vmatpush3.bf16.msra.mxu1 %v3056_v41 }
 0x12a   : > { %2802 = vmatprep.subr.bf16.mxu0 %v3057_v8  ;;  %2832 = vmatprep.subr.bf16.mxu1 %v3057_v8 }
 0x12c   : > { %1889 = vmatmul.mubr.bf16.gmra.mxu0 %v735_v9  ;;  %2002 = vmatmul.mubr.bf16.gmra.mxu1 %v3738_v0  ;;  %v3064_v0 = vld [vmem:[%s3579_s15 + $0x308] ss:$12 sps:$4 sm:$0xff]   ;;  %s682_s15 = smul.u32 3, %s3130_s18 }
 0x12d   : > { %2803 = vmatpush3.bf16.msra.mxu0 %v3058_v50  ;;  %2840 = vmatpush3.bf16.msra.mxu1 %v3058_v50 }
 0x12e   : > { %2804 = vmatprep.subr.bf16.mxu0 %v3059_v10  ;;  %2833 = vmatprep.subr.bf16.mxu1 %v3059_v10  ;;  %p683_p10 = scmp.lt.s32.totalorder %s682_s15, 5 }
 0x12f   : > { %2041 = vmatprep.mubr.bf16.mxu0 %v3773_v26  ;;  %2049 = vmatprep.mubr.bf16.mxu1 %v730_v61  ;;  %v2126_v26 = vld [vmem:[%s643_s27 + $0x40] sm:$0xff] }
 0x130   : > { %v2153_v36 = vrot.slane %v2126_v26, 4  ;;  %s4075_s15 = smov (!%p683_p10, %s682_s15), 5 }
 0x131   : > { %2805 = vmatpush3.bf16.msra.mxu0 %v3060_v11  ;;  %2841 = vmatpush3.bf16.msra.mxu1 %v3060_v11  ;;  %s685_s29 = scalar_lea.vmem %s4067_s3, %s4075_s15 }
 0x132   : > { %2806 = vmatprep.subr.bf16.mxu0 %v3061_v12  ;;  %2834 = vmatprep.subr.bf16.mxu1 %v3061_v12  ;;  %2189 = vst [vmem:[%s3856_s13 + $0xb8] sm:$0xf0] %v2153_v36  ;;  %v2159_v46 = vsel %vm2083_vm0, %v2153_v36, %v2158_v43  ;;  %v931_v12 = vlaneseq  ;;  %v3925_v18 = vld [vmem:[%s685_s29] sm:$0x7] }
 0x133   : > { %2192 = vst [vmem:[%s3856_s13 + $0xd0] sm:$0xff] %v2159_v46 }
 0x135   : > { %2807 = vmatpush3.bf16.msra.mxu0 %v3062_v56  ;;  %2842 = vmatpush3.bf16.msra.mxu1 %v3062_v56 }
 0x136   : > { %2808 = vmatprep.subr.bf16.mxu0 %v3063_v13  ;;  %2835 = vmatprep.subr.bf16.mxu1 %v3063_v13 }
 0x139   : > { %2809 = vmatpush3.bf16.msra.mxu0 %v3064_v0  ;;  %2843 = vmatpush3.bf16.msra.mxu1 %v3064_v0  ;;  %v3915_v0 = vshrl.u32 %v931_v12, 7 }
 0x13b   : > { %v933_v16 = vsub.s32 0, %v3915_v0  ;;  %v937_v20 = vsub.s32 1, %v3915_v0 }
 0x13c   : > { %2042 = vmatmul.mubr.bf16.vlgmr.msra.gmra.mxu0 %v3811_v55  ;;  %2050 = vmatmul.mubr.bf16.vlgmr.msra.gmra.mxu1 %v729_v32 }
 0x13d   : > { %2057 = vmatprep.mubr.bf16.mxu1 %v736_v6  ;;  %v934_v22 = vrot.slane %v3925_v18, %v933_v16  ;;  %v938_v23 = vrot.slane %v3925_v18, %v937_v20 }
 0x144   : > { %2058 = vmatmul.mubr.bf16.gmra.mxu1 %v735_v9 }
 0x19c   : > { %v1748_v47 = vpop.f32.mrf.mxu0  ;;  %v1809_v48 = vpop.f32.mrf.mxu1 }
 0x19d   : > { %v1749_v24 = vadd.f32 %v1748_v47, %v934_v22 }
 0x19e   : > { %v1750_v49 = vpop.f32.mrf.mxu0  ;;  %v1811_v51 = vpop.f32.mrf.mxu1 }
 0x19f   : > { %v1751_v25 = vadd.f32 %v1750_v49, %v938_v23  ;;  %v1810_v26 = vadd.f32 %v1809_v48, %v1749_v24 }
 0x1a0   : > { %v1752_v52 = vpop.f32.mrf.mxu0  ;;  %v1813_v53 = vpop.f32.mrf.mxu1 }
 0x1a1   : > { %v1753_v27 = vadd.f32 %v1752_v52, %v934_v22  ;;  %v1812_v30 = vadd.f32 %v1811_v51, %v1751_v25 }
 0x1a2   : > { %v1754_v17 = vpop.f32.mrf.mxu0  ;;  %v1815_v54 = vpop.f32.mrf.mxu1 }
 0x1a3   : > { %v1755_v31 = vadd.f32 %v1754_v17, %v938_v23  ;;  %v1814_v36 = vadd.f32 %v1813_v53, %v1753_v27 }
 0x1a4   : > { %v1758_v55 = vpop.f32.mrf.mxu0  ;;  %v1819_v57 = vpop.f32.mrf.mxu1 }
 0x1a5   : > { %v1759_v37 = vadd.f32 %v1758_v55, %v934_v22  ;;  %v1816_v42 = vadd.f32 %v1815_v54, %v1755_v31 }
 0x1a6   : > { %v1760_v58 = vpop.f32.mrf.mxu0  ;;  %v3882_v59 = vpop.f32.mrf.mxu1 }
 0x1a7   : > { %v1761_v43 = vadd.f32 %v1760_v58, %v938_v23  ;;  %v1820_v47 = vadd.f32 %v1819_v57, %v1759_v37 }
 0x1a8   : > { %v1762_v60 = vpop.f32.mrf.mxu0  ;;  %v3884_v61 = vpop.f32.mrf.mxu1 }
 0x1a9   : > { %v1763_v48 = vadd.f32 %v1762_v60, %v934_v22  ;;  %v1822_v53 = vadd.f32 %v3882_v59, %v1761_v43 }
 0x1aa   : > { %v3886_v62 = vpop.f32.mrf.mxu0  ;;  %v3888_v63 = vpop.f32.mrf.mxu1 }
 0x1ab   : > { %v1765_v17 = vadd.f32 %v3886_v62, %v938_v23 }
 0x1ac   : > { %v3890_v1 = vpop.f32.mrf.mxu1  ;;  %v3892_v2 = vpop.f32.mrf.mxu0 }
 0x1ad   : > { %v1826_v12 = vadd.f32 %v3888_v63, %v1765_v17 }
 0x1ae   : > { %v3894_v32 = vpop.f32.mrf.mxu1  ;;  %v3896_v3 = vpop.f32.mrf.mxu0 }
 0x1af   : > { %v1771_v60 = vadd.f32 %v3896_v3, %v938_v23 }
 0x1b0   : > { %v1833_v4 = vpop.f32.mrf.mxu1  ;;  %v1772_v5 = vpop.f32.mrf.mxu0 }
 0x1b1   : > { %v1824_v4 = vadd.f32 %v3884_v61, %v1763_v48  ;;  %v1769_v5 = vadd.f32 %v3892_v2, %v934_v22  ;;  %v1832_v3 = vadd.f32 %v3894_v32, %v1771_v60 }
 0x1b2   : > { %v1834_v6 = vpop.f32.mrf.mxu1  ;;  %v1773_v41 = vpop.f32.mrf.mxu0 }
 0x1b3   : > { %v1830_v61 = vadd.f32 %v3890_v1, %v1769_v5 }
 0x1bc   : > { %v3898_v7 = vpop.f32.mrf.mxu1 }
 0x1be   : > { %v3900_v8 = vpop.f32.mrf.mxu1 }
 0x1bf   : > { %v2744_v43 = vadd.f32 %v3900_v8, %v3898_v7 }
 0x1c0   : > { %v3902_v9 = vpop.f32.mrf.mxu1 }
 0x1c2   : > { %v3905_v50 = vpop.f32.mrf.mxu1 }
 0x1c4   : > { %v3907_v10 = vpop.f32.mrf.mxu1 }
 0x1c6   : > { %v3909_v11 = vpop.f32.mrf.mxu1 }
 0x1c8   : > { %v3911_v56 = vpop.f32.mrf.mxu1 }
 0x1ca   : > { %v3913_v13 = vpop.f32.mrf.mxu1 }
 0x1cc   : > { %v3917_v15 = vpop.f32.mrf.mxu1 }
 0x1ce   : > { %v3922_v14 = vpop.f32.mrf.mxu1 }
 0x1d0   : > { %v2757_v19 = vpop.f32.mrf.mxu1 }
 0x1d2   : > { %v2758_v21 = vpop.f32.mrf.mxu1 }
 0x1dc   : > { %v1870_v28 = vpop.f32.mrf.mxu0  ;;  %v3930_v29 = vpop.f32.mrf.mxu1 }
 0x1dd   : > { %v1871_v33 = vadd.f32 %v1870_v28, %v1810_v26 }
 0x1de   : > { %v1872_v34 = vpop.f32.mrf.mxu0  ;;  %v3932_v35 = vpop.f32.mrf.mxu1 }
 0x1df   : > { %2065 = vst [vmem:[%s3856_s13] sm:$0xff] %v1871_v33  ;;  %v1873_v38 = vadd.f32 %v1872_v34, %v1812_v30 }
 0x1e0   : > { %v1874_v39 = vpop.f32.mrf.mxu0  ;;  %v3935_v40 = vpop.f32.mrf.mxu1 }
 0x1e1   : > { %2066 = vst [vmem:[%s3856_s13 + $0x8] sm:$0xff] %v1873_v38  ;;  %v1875_v44 = vadd.f32 %v1874_v39, %v1814_v36  ;;  %v941_v39 = vsub.s32 2, %v3915_v0 }
 0x1e2   : > { %v1876_v45 = vpop.f32.mrf.mxu0  ;;  %v3938_v46 = vpop.f32.mrf.mxu1 }
 0x1e3   : > { %2068 = vst [vmem:[%s3856_s13 + $0x18] sm:$0xff] %v1875_v44  ;;  %v1877_v49 = vadd.f32 %v1876_v45, %v1816_v42  ;;  %v942_v42 = vrot.slane %v3925_v18, %v941_v39  ;;  %v2750_v44 = vadd.f32 %v3909_v11, %v3907_v10  ;;  %v2778_v45 = vadd.f32 %v3932_v35, %v3930_v29 }
 0x1e4   : > { %v1880_v51 = vpop.f32.mrf.mxu0  ;;  %v2782_v52 = vpop.f32.mrf.mxu1  ;;  %v2753_v18 = vadd.f32 %v3913_v13, %v3911_v56  ;;  %v2781_v7 = vadd.f32 %v3938_v46, %v3935_v40 }
 0x1e5   : > { %2069 = vst [vmem:[%s3856_s13 + $0x20] sm:$0xff] %v1877_v49  ;;  %v1881_v54 = vadd.f32 %v1880_v51, %v1820_v47  ;;  %v1932_v48 = vadd.f32 %v2744_v43, %v942_v42  ;;  %v2747_v49 = vadd.f32 %v3905_v50, %v3902_v9  ;;  %v1940_v0 = vadd.f32 %v2750_v44, %v942_v42 }
 0x1e6   : > { %v1882_v55 = vpop.f32.mrf.mxu0  ;;  %v2783_v58 = vpop.f32.mrf.mxu1 }
 0x1e7   : > { %2071 = vst [vmem:[%s3856_s13 + $0x30] sm:$0xf] %v1881_v54  ;;  %v1883_v57 = vadd.f32 %v1882_v55, %v1822_v53  ;;  %v2084_v19 = vrot.slane %v1881_v54, 4  ;;  %v2784_v47 = vadd.f32 %v2783_v58, %v2782_v52  ;;  %v1988_v17 = vadd.f32 %v2778_v45, %v1932_v48 }
 0x1e8   : > { %v1884_v6 = vpop.f32.mrf.mxu0  ;;  %v2785_v41 = vpop.f32.mrf.mxu1  ;;  %v1935_v54 = vadd.f32 %v2747_v49, %v942_v42  ;;  %v1943_v55 = vadd.f32 %v2753_v18, %v942_v42  ;;  %v2756_v58 = vadd.f32 %v3922_v14, %v3917_v15  ;;  %v2270_v18 = vld [vmem:[%s3856_s13 + $0xd0] sm:$0xff] (%p3149_p5) }
 0x1e9   : > { %2072 = vst [vmem:[%s3856_s13 + $0x38] sm:$0xf] %v1883_v57  ;;  %v1885_v59 = vadd.f32 %v1884_v6, %v1824_v4  ;;  %v2087_v23 = vrot.slane %v1883_v57, 4  ;;  %v1996_v11 = vadd.f32 %v2784_v47, %v1940_v0  ;;  %v2268_v0 = vld [vmem:[%s3856_s13 + $0xc8] sm:$0xff] (%p3149_p5)  ;;  %2271 = vst [vmem:[%s3998_s6 + $0x190] sm:$0xff] (%p3149_p5), %v2270_v18 }
 0x1ea   : > { %v1886_v62 = vpop.f32.mrf.mxu0  ;;  %v2786_v16 = vpop.f32.mrf.mxu1  ;;  %v1991_v4 = vadd.f32 %v2781_v7, %v1935_v54  ;;  %2269 = vst [vmem:[%s3998_s6 + $0x188] sm:$0xff] (%p3149_p5), %v2268_v0  ;;  %v2274_v7 = vld [vmem:[%s3856_s13 + $0xe0] sm:$0xff] (%p3149_p5) }
 0x1eb   : > { %v2085_v20 = vrot.slane %v1885_v59, 4  ;;  %v1887_v21 = vadd.f32 %v1886_v62, %v1826_v12  ;;  %v2787_v29 = vadd.f32 %v2786_v16, %v2785_v41  ;;  %v1948_v12 = vadd.f32 %v2756_v58, %v942_v42  ;;  %2275 = vst [vmem:[%s3998_s6 + $0x1b8] sm:$0xff] (%p3149_p5), %v2274_v7 }
 0x1ec   : > { %v1890_v2 = vpop.f32.mrf.mxu0  ;;  %v2788_v22 = vpop.f32.mrf.mxu1 }
 0x1ed   : > { %v2086_v63 = vsel %vm2083_vm0, %v2084_v19, %v2085_v20  ;;  %v2088_v24 = vrot.slane %v1887_v21, 4  ;;  %v1891_v25 = vadd.f32 %v1890_v2, %v1830_v61  ;;  %v1999_v5 = vadd.f32 %v2787_v29, %v1943_v55 }
 0x1ee   : > { %2711 = vst [vmem:[%s3856_s13 + $0x78] sm:$0xff] %v2086_v63  ;;  %v1892_v26 = vpop.f32.mrf.mxu0  ;;  %v2789_v27 = vpop.f32.mrf.mxu1  ;;  %v2218_v63 = vld [vmem:[%s3856_s13] sm:$0xff] (%p3149_p5) }
 0x1ef   : > { %v2089_v28 = vsel %vm2083_vm0, %v2087_v23, %v2088_v24  ;;  %v2093_v30 = vrot.slane %v1891_v25, 4  ;;  %v1893_v1 = vadd.f32 %v1892_v26, %v1832_v3  ;;  %v2790_v57 = vadd.f32 %v2789_v27, %v2788_v22  ;;  %v2224_v26 = vld [vmem:[%s3856_s13 + $0x18] sm:$0xff] (%p3149_p5)  ;;  %v2226_v27 = vld [vmem:[%s3856_s13 + $0x20] sm:$0xff] (%p3149_p5)  ;;  %2219 = vst [vmem:[%s3998_s6] sm:$0xff] (%p3149_p5), %v2218_v63 }
 0x1f0   : > { %2712 = vst [vmem:[%s3856_s13 + $0x80] sm:$0xff] %v2089_v28  ;;  %v2791_v31 = vpop.f32.mrf.mxu1  ;;  %v1894_v33 = vpop.f32.mrf.mxu0  ;;  %2225 = vst [vmem:[%s3998_s6 + $0x30] sm:$0xff] (%p3149_p5), %v2224_v26 }
 0x1f1   : > { %v2094_v32 = vsel %vm2083_vm0, %v2085_v20, %v2093_v30  ;;  %2717 = vst [vmem:[%s3856_s13 + $0xa8] sm:$0xf] %v2093_v30  ;;  %v2095_v34 = vrot.slane %v1893_v1, 4  ;;  %v2004_v14 = vadd.f32 %v2790_v57, %v1948_v12  ;;  %v2230_v30 = vld [vmem:[%s3856_s13 + $0x30] sm:$0xff] (%p3149_p5)  ;;  %v2232_v1 = vld [vmem:[%s3856_s13 + $0x38] sm:$0xff] (%p3149_p5)  ;;  %2227 = vst [vmem:[%s3998_s6 + $0x38] sm:$0xff] (%p3149_p5), %v2226_v27 }
 0x1f2   : > { %2714 = vst [vmem:[%s3856_s13 + $0x90] sm:$0xff] %v2094_v32  ;;  %v2792_v36 = vpop.f32.mrf.mxu1  ;;  %v1895_v37 = vpop.f32.mrf.mxu0  ;;  %2231 = vst [vmem:[%s3998_s6 + $0x60] sm:$0xff] (%p3149_p5), %v2230_v30  ;;  %v2236_v33 = vld [vmem:[%s3856_s13 + $0x48] sm:$0xff] (%p3149_p5)  ;;  %v2238_v32 = vld [vmem:[%s3856_s13 + $0x50] sm:$0xff] (%p3149_p5) }
 0x1f3   : > { %v2096_v38 = vsel %vm2083_vm0, %v2088_v24, %v2095_v34  ;;  %2718 = vst [vmem:[%s3856_s13 + $0xb0] sm:$0xf] %v2095_v34  ;;  %v2220_v24 = vld [vmem:[%s3856_s13 + $0x8] sm:$0xff] (%p3149_p5)  ;;  %2233 = vst [vmem:[%s3998_s6 + $0x68] sm:$0xff] (%p3149_p5), %v2232_v1  ;;  %v2240_v34 = vld [vmem:[%s3856_s13 + $0x58] sm:$0xff] (%p3149_p5) }
 0x1f4   : > { %2715 = vst [vmem:[%s3856_s13 + $0x98] sm:$0xff] %v2096_v38  ;;  %2221 = vst [vmem:[%s3998_s6 + $0x8] sm:$0xff] (%p3149_p5), %v2220_v24  ;;  %v2242_v36 = vld [vmem:[%s3856_s13 + $0x60] sm:$0xff] (%p3149_p5)  ;;  %v2244_v37 = vld [vmem:[%s3856_s13 + $0x68] sm:$0xff] (%p3149_p5) }
 0x1f5   : > { %2237 = vst [vmem:[%s3998_s6 + $0x90] sm:$0xff] (%p3149_p5), %v2236_v33  ;;  %2239 = vst [vmem:[%s3998_s6 + $0x98] sm:$0xff] (%p3149_p5), %v2238_v32  ;;  %v2246_v38 = vld [vmem:[%s3856_s13 + $0x70] sm:$0xff] (%p3149_p5)  ;;  %v2248_v39 = vld [vmem:[%s3856_s13 + $0x78] sm:$0xff] (%p3149_p5) }
 0x1f6   : > { %2241 = vst [vmem:[%s3998_s6 + $0xa0] sm:$0xff] (%p3149_p5), %v2240_v34  ;;  %2243 = vst [vmem:[%s3998_s6 + $0xc0] sm:$0xff] (%p3149_p5), %v2242_v36 }
 0x1f7   : > { %2245 = vst [vmem:[%s3998_s6 + $0xc8] sm:$0xff] (%p3149_p5), %v2244_v37  ;;  %2247 = vst [vmem:[%s3998_s6 + $0xd0] sm:$0xff] (%p3149_p5), %v2246_v38  ;;  %v2250_v42 = vld [vmem:[%s3856_s13 + $0x80] sm:$0xff] (%p3149_p5) }
 0x1f8   : > { %2249 = vst [vmem:[%s3998_s6 + $0xf0] sm:$0xff] (%p3149_p5), %v2248_v39  ;;  %2251 = vst [vmem:[%s3998_s6 + $0xf8] sm:$0xff] (%p3149_p5), %v2250_v42  ;;  %v2260_v48 = vld [vmem:[%s3856_s13 + $0xa8] sm:$0xff] (%p3149_p5) }
 0x1f9   : > { %v2254_v44 = vld [vmem:[%s3856_s13 + $0x90] sm:$0xff] (%p3149_p5)  ;;  %2261 = vst [vmem:[%s3998_s6 + $0x150] sm:$0xff] (%p3149_p5), %v2260_v48 }
 0x1fa   : > { %2255 = vst [vmem:[%s3998_s6 + $0x120] sm:$0xff] (%p3149_p5), %v2254_v44  ;;  %v2262_v49 = vld [vmem:[%s3856_s13 + $0xb0] sm:$0xff] (%p3149_p5) }
 0x1fb   : > { %v2256_v45 = vld [vmem:[%s3856_s13 + $0x98] sm:$0xff] (%p3149_p5)  ;;  %2263 = vst [vmem:[%s3998_s6 + $0x158] sm:$0xff] (%p3149_p5), %v2262_v49 }
 0x1fc   : > { %v2810_v51 = vpop.f32.mrf.mxu0  ;;  %v2816_v53 = vpop.f32.mrf.mxu1  ;;  %2257 = vst [vmem:[%s3998_s6 + $0x128] sm:$0xff] (%p3149_p5), %v2256_v45 }
 0x1fe   : > { %v2811_v8 = vpop.f32.mrf.mxu0  ;;  %v2817_v10 = vpop.f32.mrf.mxu1 }
 0x1ff   : > { %v2812_v35 = vadd.f32 %v2811_v8, %v2810_v51  ;;  %v2818_v52 = vadd.f32 %v2817_v10, %v2816_v53  ;;  %v2266_v53 = vld [vmem:[%s3856_s13 + $0xc0] sm:$0xff] (%p3149_p5)  ;;  %v2276_v8 = vld [vmem:[%s3856_s13 + $0xe8] sm:$0xff] (%p3149_p5) }
 0x200   : > { %v2813_v9 = vpop.f32.mrf.mxu0  ;;  %v2819_v50 = vpop.f32.mrf.mxu1  ;;  %2267 = vst [vmem:[%s3998_s6 + $0x180] sm:$0xff] (%p3149_p5), %v2266_v53  ;;  %2277 = vst [vmem:[%s3998_s6 + $0x1c0] sm:$0xff] (%p3149_p5), %v2276_v8 }
 0x201   : > { %v2044_v56 = vadd.f32 %v2812_v35, %v1988_v17  ;;  %v2052_v13 = vadd.f32 %v2818_v52, %v1996_v11  ;;  %v2272_v17 = vld [vmem:[%s3856_s13 + $0xd8] sm:$0xff] (%p3149_p5) }
 0x202   : > { %v2814_v40 = vpop.f32.mrf.mxu0  ;;  %v2820_v46 = vpop.f32.mrf.mxu1  ;;  %2273 = vst [vmem:[%s3998_s6 + $0x1b0] sm:$0xff] (%p3149_p5), %v2272_v17 }
 0x203   : > { %2067 = vst [vmem:[%s3856_s13 + $0x10] sm:$0xff] %v2044_v56  ;;  %2073 = vst [vmem:[%s3856_s13 + $0x40] sm:$0xf] %v2052_v13  ;;  %v2815_v60 = vadd.f32 %v2814_v40, %v2813_v9  ;;  %v2821_v6 = vadd.f32 %v2820_v46, %v2819_v50  ;;  %v2090_v16 = vrot.slane %v2052_v13, 4 }
 0x204   : > { %v2822_v41 = vpop.f32.mrf.mxu1 }
 0x205   : > { %v2047_v59 = vadd.f32 %v2815_v60, %v1991_v4  ;;  %v2055_v62 = vadd.f32 %v2821_v6, %v1999_v5 }
 0x206   : > { %v2823_v15 = vpop.f32.mrf.mxu1 }
 0x207   : > { %2070 = vst [vmem:[%s3856_s13 + $0x28] sm:$0xff] %v2047_v59  ;;  %v2091_v19 = vrot.slane %v2055_v62, 4  ;;  %v2824_v20 = vadd.f32 %v2823_v15, %v2822_v41 }
 0x208   : > { %v2825_v21 = vpop.f32.mrf.mxu1 }
 0x209   : > { %v2092_v61 = vsel %vm2083_vm0, %v2090_v16, %v2091_v19  ;;  %v2060_v2 = vadd.f32 %v2824_v20, %v2004_v14 }
 0x20a   : > { %2713 = vst [vmem:[%s3856_s13 + $0x88] sm:$0xff] %v2092_v61  ;;  %v2826_v22 = vpop.f32.mrf.mxu1  ;;  %2202 = sbr.rel (!%p3149_p5) target bundleno = 535 (0x217), region = 89  ;;  %v2222_v25 = vld [vmem:[%s3856_s13 + $0x10] sm:$0xff] (%p3149_p5)  ;;  %v2234_v31 = vld [vmem:[%s3856_s13 + $0x40] sm:$0xff] (%p3149_p5) }
 0x20b   : > { %v2097_v3 = vrot.slane %v2060_v2, 4  ;;  %2223 = vst [vmem:[%s3998_s6 + $0x10] sm:$0xff] (%p3149_p5), %v2222_v25  ;;  %2235 = vst [vmem:[%s3998_s6 + $0x70] sm:$0xff] (%p3149_p5), %v2234_v31 }
 0x20d   : > { %v2098_v23 = vsel %vm2083_vm0, %v2091_v19, %v2097_v3  ;;  %2719 = vst [vmem:[%s3856_s13 + $0xb8] sm:$0xf] %v2097_v3 }
 0x20e   : > { %2716 = vst [vmem:[%s3856_s13 + $0xa0] sm:$0xff] %v2098_v23  ;;  %v2228_v28 = vld [vmem:[%s3856_s13 + $0x28] sm:$0xff] (%p3149_p5) }
 0x20f   : > { %2229 = vst [vmem:[%s3998_s6 + $0x40] sm:$0xff] %v2228_v28 }
 0x211   : > { %v2252_v43 = vld [vmem:[%s3856_s13 + $0x88] sm:$0xff] }
 0x212   : > { %2253 = vst [vmem:[%s3998_s6 + $0x100] sm:$0xff] %v2252_v43 }
 0x214   : > { %v2264_v51 = vld [vmem:[%s3856_s13 + $0xb8] sm:$0xff] }
 0x215   : > { %v2258_v47 = vld [vmem:[%s3856_s13 + $0xa0] sm:$0xff]  ;;  %2265 = vst [vmem:[%s3998_s6 + $0x160] sm:$0xff] %v2264_v51 }
 0x216   : > { %2259 = vst [vmem:[%s3998_s6 + $0x130] sm:$0xff] %v2258_v47 }
 0x217 PF: > { %p11_p11 = scmp.ge.s32.totalorder %s3133_s19, 4   ;;  %s4071_s15 = smov %s3083_s16 }
 0x218   : > { %s4072_s16 = smov %s3143_s22  ;;  %s4073_s17 = smov %s3133_s19 }
 0x219   :  { %13 = sbr.rel (!%p11_p11) target bundleno = 2 (0x2), region = 161 }

</bundles_post_ra>
